<compile_context>
chip_gen: v6e
topology: v6e:2x2x1
jax: 0.10.0
libtpu: 0.0.40
codegen_flags: <defaults>
</compile_context>

<pallas_src>
import functools

import jax
import jax.numpy as jnp
from jax.experimental import pallas as pl
from jax.experimental.pallas import tpu as pltpu


_LN_EPS = 1e-5
_HEAD_PAD = 128  # lane-dense fused-head width: lanes 0..A-1 = advantages, lane A = V(s)


def _round_up(x, m):
    return ((x + m - 1) // m) * m


def _leaky_relu(x):
    # nn.LeakyReLU default negative_slope = 0.01
    return jnp.where(x > 0, x, 0.01 * x)


def _mlp_qnet_kernel(
    obs_ref,            # (TB, D_in)  caller dtype (f32 or bf16)
    w1_ref, b1_ref,     # (D_in, 512) bf16, (1, 512) f32
    w2_ref, b2_ref,     # (512, 512) bf16 (LN gamma folded), (1, 512) f32 (LN beta folded)
    wh1_ref, bh1_ref,   # fused [ws1 | wa1]              (512, 512) bf16, (1, 512) f32
    wh2_ref, bh2_ref,   # block-diag ws2 (+) wa2          (512, 128) bf16, (1, 128) f32
    wh3_ref, bh3_ref,   # block-diag wa3/ws3, zero-padded (128, 128) bf16, (1, 128) f32
    out_ref,            # (TB, 128) f32; lanes 0..A-1 hold the Q-values
    *, n_action,
):
    bf16 = jnp.bfloat16
    x = obs_ref[...].astype(bf16)

    # ---- shared layers: Linear(D_in,512) -> LeakyReLU -> LayerNorm(512) ----
    # (LayerNorm affine is folded into w2/b2, so only normalization happens here.)
    h = jnp.dot(x, w1_ref[...], preferred_element_type=jnp.float32) + b1_ref[...]
    h = _leaky_relu(h)
    mu = jnp.mean(h, axis=-1, keepdims=True)
    ms = jnp.mean(h * h, axis=-1, keepdims=True)
    var = jnp.maximum(ms - mu * mu, 0.0)          # E[h^2]-mu^2; clamp tiny negatives
    hn = (h - mu) * jax.lax.rsqrt(var + _LN_EPS)  # rsqrt -> EUP slot

    # ---- Linear(512,512) (gamma/beta folded in) -> LeakyReLU ----
    feat = _leaky_relu(
        jnp.dot(hn.astype(bf16), w2_ref[...], preferred_element_type=jnp.float32)
        + b2_ref[...])

    # ---- fused dueling heads (value + advantage share lane-dense matmuls) ----
    h1 = _leaky_relu(
        jnp.dot(feat.astype(bf16), wh1_ref[...], preferred_element_type=jnp.float32)
        + bh1_ref[...])
    h2 = _leaky_relu(
        jnp.dot(h1.astype(bf16), wh2_ref[...], preferred_element_type=jnp.float32)
        + bh2_ref[...])
    z = (jnp.dot(h2.astype(bf16), wh3_ref[...], preferred_element_type=jnp.float32)
         + bh3_ref[...])

    # z: lanes 0..A-1 = advantages, lane A = V(s), lanes A+1..127 are EXACT zeros
    # (zero-padded weights + zero bias), so a full-width lane reduce is exact.
    # Do NOT add anything (bias/eps) to those padded lanes in _fuse_params.
    s = z[:, n_action:n_action + 1]                   # (TB, 1) state value
    a_sum = jnp.sum(z, axis=-1, keepdims=True) - s    # sum of the A advantages (exact)
    # Q = V + A - mean(A); lanes >= n_action are garbage and sliced away outside.
    out_ref[...] = z + s - a_sum * (1.0 / n_action)


def _fuse_params(params, n_action):
    """Fold LN affine into w2/b2, fuse the dueling heads, cast matmul weights to bf16."""
    f32, bf16 = jnp.float32, jnp.bfloat16
    assert 1 + n_action <= _HEAD_PAD, "n_action must fit in the 128-lane head slab"

    # --- fold LayerNorm gamma/beta into the second shared Linear (in f32) ---
    # (hn * g + be) @ w2 + b2 == hn @ (g[:, None] * w2) + (be @ w2 + b2)
    g = params["ln_g"].astype(f32).reshape(-1)        # (512,)
    be = params["ln_b"].astype(f32)                   # (1, 512)
    w2 = params["w2"].astype(f32)
    b2 = params["b2"].astype(f32)
    w2f = g[:, None] * w2
    b2f = be @ w2 + b2

    ws1, bs1 = params["ws1"], params["bs1"]
    ws2, bs2 = params["ws2"], params["bs2"]
    ws3, bs3 = params["ws3"], params["bs3"]
    wa1, ba1 = params["wa1"], params["ba1"]
    wa2, ba2 = params["wa2"], params["ba2"]
    wa3, ba3 = params["wa3"], params["ba3"]

    # head layer 1: concat along the output dim -> (512, 512)
    # cols 0..255 = state branch, cols 256..511 = advantage branch
    wh1 = jnp.concatenate([ws1, wa1], axis=1)
    bh1 = jnp.concatenate([bs1, ba1], axis=1)

    # head layer 2: block diagonal -> (512, 128)
    wh2 = jnp.zeros((ws2.shape[0] + wa2.shape[0], ws2.shape[1] + wa2.shape[1]), f32)
    wh2 = wh2.at[:ws2.shape[0], :ws2.shape[1]].set(ws2)
    wh2 = wh2.at[ws2.shape[0]:, ws2.shape[1]:].set(wa2)
    bh2 = jnp.concatenate([bs2, ba2], axis=1)

    # head layer 3: block diagonal, zero-padded to 128 output lanes -> (128, 128)
    # lanes 0..A-1 = advantages, lane A = V(s), lanes A+1..127 = exact zeros
    # (the in-kernel dueling sum relies on those zeros).
    d_s = ws3.shape[0]
    d_a = wa3.shape[0]
    wh3 = jnp.zeros((d_s + d_a, _HEAD_PAD), f32)
    wh3 = wh3.at[d_s:, :n_action].set(wa3)
    wh3 = wh3.at[:d_s, n_action:n_action + 1].set(ws3)
    bh3 = jnp.zeros((1, _HEAD_PAD), f32)
    bh3 = bh3.at[:, :n_action].set(ba3)
    bh3 = bh3.at[:, n_action:n_action + 1].set(bs3)

    return (
        params["w1"].astype(bf16), params["b1"].astype(f32),
        w2f.astype(bf16), b2f,
        wh1.astype(bf16), bh1.astype(f32),
        wh2.astype(bf16), bh2.astype(f32),
        wh3.astype(bf16), bh3,
    )


def mlp_qnetwork_forward(obs_nchw, params, *, block_b=512):
    """obs_nchw: (B, C, H, W), float32 or bfloat16.  params: dict of (in,out)-layout weights.

    Pass bf16 obs (when the cast fuses with the upstream producer) to halve the
    dominant obs DMA on v6e/v7x; the kernel casts to bf16 either way.
    """
    obs = jnp.asarray(obs_nchw)
    B = obs.shape[0]
    d_in = 1
    for d in obs.shape[1:]:
        d_in *= d
    x = obs.reshape(B, d_in)                      # nn.Flatten (row-major), dtype preserved

    n_action = params["wa3"].shape[1]
    assert 1 + n_action <= _HEAD_PAD, "n_action must fit in the 128-lane head slab"

    # Batch tile: multiple of 8 sublanes, capped at block_b (512 is v7x-VMEM-safe),
    # and chosen so there are >= 2 grid steps when B > 8 (engages v7x's 2nd TC via
    # the "parallel" batch axis).  If a single block covers everything, use
    # tb == B exactly (block dims equal to the full array dim are legal), so no
    # jnp.pad / extra HBM copy is ever issued.
    tb = min(block_b, max(8, _round_up(pl.cdiv(B, 2), 8)))
    if tb >= B:
        tb = B
    nb = pl.cdiv(B, tb)

    fused = _fuse_params(params, n_action)
    args = (x,) + fused

    # obs/out tiled over the batch grid; every weight/bias pinned to block (0, 0)
    # so it stays VMEM-resident across grid iterations.
    in_specs = [pl.BlockSpec((tb, d_in), lambda i: (i, 0))]
    in_specs += [pl.BlockSpec(a.shape, lambda i: (0, 0)) for a in args[1:]]
    out_specs = pl.BlockSpec((tb, _HEAD_PAD), lambda i: (i, 0))

    mm_elems = sum(int(w.size) for w in (fused[0], fused[2], fused[4], fused[6], fused[8]))
    cost = pl.CostEstimate(
        flops=2 * B * mm_elems,
        transcendentals=B,  # one rsqrt per row (LayerNorm)
        bytes_accessed=sum(int(a.size) * a.dtype.itemsize for a in args)
        + B * _HEAD_PAD * 4,
    )

    out = pl.pallas_call(
        functools.partial(_mlp_qnet_kernel, n_action=n_action),
        out_shape=jax.ShapeDtypeStruct((B, _HEAD_PAD), jnp.float32),
        grid=(nb,),
        in_specs=in_specs,
        out_specs=out_specs,
        compiler_params=pltpu.CompilerParams(
            dimension_semantics=("parallel",)),  # megacore / v7x dual-TC friendly
        cost_estimate=cost,
    )(*args)

    # Q-values live at lanes 0..n_action-1 -> lane-0 aligned slice (no lane shift).
    return out[:, :n_action]


def make_params(key, d_in, n_action):
    """Deterministic synthetic parameters (shapes match the torch module, stored (in, out))."""
    def lin(k, fan_in, fan_out):
        kw, kb = jax.random.split(k)
        bound = 1.0 / jnp.sqrt(fan_in)
        w = jax.random.uniform(kw, (fan_in, fan_out), jnp.float32, -bound, bound)
        b = jax.random.uniform(kb, (1, fan_out), jnp.float32, -bound, bound)
        return w, b

    keys = jax.random.split(key, 8)
    p = {}
    p["w1"], p["b1"] = lin(keys[0], d_in, 512)
    p["ln_g"] = jnp.ones((1, 512), jnp.float32)      # torch LayerNorm default init
    p["ln_b"] = jnp.zeros((1, 512), jnp.float32)
    p["w2"], p["b2"] = lin(keys[1], 512, 512)
    p["ws1"], p["bs1"] = lin(keys[2], 512, 256)
    p["ws2"], p["bs2"] = lin(keys[3], 256, 64)
    p["ws3"], p["bs3"] = lin(keys[4], 64, 1)
    p["wa1"], p["ba1"] = lin(keys[5], 512, 256)
    p["wa2"], p["ba2"] = lin(keys[6], 256, 64)
    p["wa3"], p["ba3"] = lin(keys[7], 64, n_action)
    return p


if __name__ == "__main__":
    B, C, H, W = 2, 4, 16, 16          # state_shape = (4, 16, 16) -> d_in = 1024
    n_action = 6
    d_in = C * H * W

    key = jax.random.PRNGKey(0)
    k_obs, k_par = jax.random.split(key)
    obs = jax.random.normal(k_obs, (B, C, H, W), jnp.float32)
    params = make_params(k_par, d_in, n_action)

    q = mlp_qnetwork_forward(obs, params)
    jax.block_until_ready(q)

    # pure-f32 JAX reference of the exact torch forward pass
    def ref(obs, p):
        x = obs.reshape(obs.shape[0], -1)
        lr = lambda v: jnp.where(v > 0, v, 0.01 * v)
        h = lr(x @ p["w1"] + p["b1"])
        mu = h.mean(-1, keepdims=True)
        var = ((h - mu) ** 2).mean(-1, keepdims=True)
        h = (h - mu) / jnp.sqrt(var + 1e-5) * p["ln_g"] + p["ln_b"]
        feat = lr(h @ p["w2"] + p["b2"])
        s = lr(feat @ p["ws1"] + p["bs1"]); s = lr(s @ p["ws2"] + p["bs2"]); s = s @ p["ws3"] + p["bs3"]
        a = lr(feat @ p["wa1"] + p["ba1"]); a = lr(a @ p["wa2"] + p["ba2"]); a = a @ p["wa3"] + p["ba3"]
        return s + a - a.mean(-1, keepdims=True)

    q_ref = ref(obs, params)
    assert q.shape == (B, n_action)
    # kernel uses bf16 weights on the MXU -> compare at bf16-level tolerance
    assert jnp.allclose(q, q_ref, atol=2e-2, rtol=2e-2), \
        f"max abs diff {float(jnp.max(jnp.abs(q - q_ref)))}"
    print("KERNEL_OK")
</pallas_src>

<mosaic_0001>
module attributes {stable_mosaic.version = 11 : i64} {
  func.func @_mlp_qnet_kernel(%arg0: i32, %arg1: memref<2x1024xf32, #tpu.memory_space<vmem>>, %arg2: memref<1024x512xbf16, #tpu.memory_space<vmem>>, %arg3: memref<1x512xf32, #tpu.memory_space<vmem>>, %arg4: memref<512x512xbf16, #tpu.memory_space<vmem>>, %arg5: memref<1x512xf32, #tpu.memory_space<vmem>>, %arg6: memref<512x512xbf16, #tpu.memory_space<vmem>>, %arg7: memref<1x512xf32, #tpu.memory_space<vmem>>, %arg8: memref<512x128xbf16, #tpu.memory_space<vmem>>, %arg9: memref<1x128xf32, #tpu.memory_space<vmem>>, %arg10: memref<128x128xbf16, #tpu.memory_space<vmem>>, %arg11: memref<1x128xf32, #tpu.memory_space<vmem>>, %arg12: memref<2x128xf32, #tpu.memory_space<vmem>>) attributes {dimension_semantics = [#tpu.dimension_semantics<parallel>], iteration_bounds = array<i64: 1>, scalar_prefetch = 0 : i64, scratch_operands = 0 : i64, tpu.core_type = #tpu.core_type<tc>, window_params = [{transform_indices = @transform_0, window_bounds = array<i64: 2, 1024>}, {pipeline_mode = #tpu.pipeline_mode<synchronous>, transform_indices = @transform_1, window_bounds = array<i64: 1024, 512>}, {pipeline_mode = #tpu.pipeline_mode<synchronous>, transform_indices = @transform_2, window_bounds = array<i64: 1, 512>}, {pipeline_mode = #tpu.pipeline_mode<synchronous>, transform_indices = @transform_3, window_bounds = array<i64: 512, 512>}, {pipeline_mode = #tpu.pipeline_mode<synchronous>, transform_indices = @transform_4, window_bounds = array<i64: 1, 512>}, {pipeline_mode = #tpu.pipeline_mode<synchronous>, transform_indices = @transform_5, window_bounds = array<i64: 512, 512>}, {pipeline_mode = #tpu.pipeline_mode<synchronous>, transform_indices = @transform_6, window_bounds = array<i64: 1, 512>}, {pipeline_mode = #tpu.pipeline_mode<synchronous>, transform_indices = @transform_7, window_bounds = array<i64: 512, 128>}, {pipeline_mode = #tpu.pipeline_mode<synchronous>, transform_indices = @transform_8, window_bounds = array<i64: 1, 128>}, {pipeline_mode = #tpu.pipeline_mode<synchronous>, transform_indices = @transform_9, window_bounds = array<i64: 128, 128>}, {pipeline_mode = #tpu.pipeline_mode<synchronous>, transform_indices = @transform_10, window_bounds = array<i64: 1, 128>}, {transform_indices = @transform_11, window_bounds = array<i64: 2, 128>}]} {
    %c0 = arith.constant 0 : index
    %c0_0 = arith.constant 0 : index
    %0 = vector.load %arg1[%c0, %c0_0] : memref<2x1024xf32, #tpu.memory_space<vmem>>, vector<2x1024xf32>
    %1 = arith.truncf %0 : vector<2x1024xf32> to vector<2x1024xbf16>
    %c0_1 = arith.constant 0 : index
    %c0_2 = arith.constant 0 : index
    %2 = vector.load %arg2[%c0_1, %c0_2] : memref<1024x512xbf16, #tpu.memory_space<vmem>>, vector<1024x512xbf16>
    %cst = arith.constant dense<0.000000e+00> : vector<2x512xf32>
    %3 = tpu.matmul %1, %2, %cst {dimension_numbers = #tpu.dot_dimension_numbers<[1], [0], [0], [1], [0, 0, 1, 1], [], []>} : vector<2x1024xbf16>, vector<1024x512xbf16>, vector<2x512xf32> -> vector<2x512xf32>
    %c0_3 = arith.constant 0 : index
    %c0_4 = arith.constant 0 : index
    %4 = vector.load %arg3[%c0_3, %c0_4] : memref<1x512xf32, #tpu.memory_space<vmem>>, vector<1x512xf32>
    %5 = vector.broadcast %4 : vector<1x512xf32> to vector<2x512xf32>
    %6 = arith.addf %3, %5 : vector<2x512xf32>
    %cst_5 = arith.constant 0.000000e+00 : f32
    %7 = vector.broadcast %cst_5 : f32 to vector<2x512xf32>
    %8 = arith.cmpf ogt, %6, %7 : vector<2x512xf32>
    %cst_6 = arith.constant 0.00999999977 : f32
    %9 = vector.broadcast %cst_6 : f32 to vector<2x512xf32>
    %10 = arith.mulf %9, %6 : vector<2x512xf32>
    %11 = arith.select %8, %6, %10 : vector<2x512xi1>, vector<2x512xf32>
    %cst_7 = arith.constant dense<0.000000e+00> : vector<2xf32>
    %12 = vector.multi_reduction <add>, %11, %cst_7 [1] : vector<2x512xf32> to vector<2xf32>
    %13 = vector.shape_cast %12 : vector<2xf32> to vector<2x1xf32>
    %cst_8 = arith.constant 5.120000e+02 : f32
    %14 = vector.broadcast %cst_8 : f32 to vector<2x1xf32>
    %15 = arith.divf %13, %14 : vector<2x1xf32>
    %16 = arith.mulf %11, %11 : vector<2x512xf32>
    %cst_9 = arith.constant dense<0.000000e+00> : vector<2xf32>
    %17 = vector.multi_reduction <add>, %16, %cst_9 [1] : vector<2x512xf32> to vector<2xf32>
    %18 = vector.shape_cast %17 : vector<2xf32> to vector<2x1xf32>
    %cst_10 = arith.constant 5.120000e+02 : f32
    %19 = vector.broadcast %cst_10 : f32 to vector<2x1xf32>
    %20 = arith.divf %18, %19 : vector<2x1xf32>
    %21 = arith.mulf %15, %15 : vector<2x1xf32>
    %22 = arith.subf %20, %21 : vector<2x1xf32>
    %cst_11 = arith.constant 0.000000e+00 : f32
    %23 = vector.broadcast %cst_11 : f32 to vector<2x1xf32>
    %24 = arith.maximumf %22, %23 : vector<2x1xf32>
    %25 = vector.broadcast %15 : vector<2x1xf32> to vector<2x512xf32>
    %26 = arith.subf %11, %25 : vector<2x512xf32>
    %cst_12 = arith.constant 9.99999974E-6 : f32
    %27 = vector.broadcast %cst_12 : f32 to vector<2x1xf32>
    %28 = arith.addf %24, %27 : vector<2x1xf32>
    %29 = math.rsqrt %28 : vector<2x1xf32>
    %30 = vector.broadcast %29 : vector<2x1xf32> to vector<2x512xf32>
    %31 = arith.mulf %26, %30 : vector<2x512xf32>
    %32 = arith.truncf %31 : vector<2x512xf32> to vector<2x512xbf16>
    %c0_13 = arith.constant 0 : index
    %c0_14 = arith.constant 0 : index
    %33 = vector.load %arg4[%c0_13, %c0_14] : memref<512x512xbf16, #tpu.memory_space<vmem>>, vector<512x512xbf16>
    %cst_15 = arith.constant dense<0.000000e+00> : vector<2x512xf32>
    %34 = tpu.matmul %32, %33, %cst_15 {dimension_numbers = #tpu.dot_dimension_numbers<[1], [0], [0], [1], [0, 0, 1, 1], [], []>} : vector<2x512xbf16>, vector<512x512xbf16>, vector<2x512xf32> -> vector<2x512xf32>
    %c0_16 = arith.constant 0 : index
    %c0_17 = arith.constant 0 : index
    %35 = vector.load %arg5[%c0_16, %c0_17] : memref<1x512xf32, #tpu.memory_space<vmem>>, vector<1x512xf32>
    %36 = vector.broadcast %35 : vector<1x512xf32> to vector<2x512xf32>
    %37 = arith.addf %34, %36 : vector<2x512xf32>
    %cst_18 = arith.constant 0.000000e+00 : f32
    %38 = vector.broadcast %cst_18 : f32 to vector<2x512xf32>
    %39 = arith.cmpf ogt, %37, %38 : vector<2x512xf32>
    %cst_19 = arith.constant 0.00999999977 : f32
    %40 = vector.broadcast %cst_19 : f32 to vector<2x512xf32>
    %41 = arith.mulf %40, %37 : vector<2x512xf32>
    %42 = arith.select %39, %37, %41 : vector<2x512xi1>, vector<2x512xf32>
    %43 = arith.truncf %42 : vector<2x512xf32> to vector<2x512xbf16>
    %c0_20 = arith.constant 0 : index
    %c0_21 = arith.constant 0 : index
    %44 = vector.load %arg6[%c0_20, %c0_21] : memref<512x512xbf16, #tpu.memory_space<vmem>>, vector<512x512xbf16>
    %cst_22 = arith.constant dense<0.000000e+00> : vector<2x512xf32>
    %45 = tpu.matmul %43, %44, %cst_22 {dimension_numbers = #tpu.dot_dimension_numbers<[1], [0], [0], [1], [0, 0, 1, 1], [], []>} : vector<2x512xbf16>, vector<512x512xbf16>, vector<2x512xf32> -> vector<2x512xf32>
    %c0_23 = arith.constant 0 : index
    %c0_24 = arith.constant 0 : index
    %46 = vector.load %arg7[%c0_23, %c0_24] : memref<1x512xf32, #tpu.memory_space<vmem>>, vector<1x512xf32>
    %47 = vector.broadcast %46 : vector<1x512xf32> to vector<2x512xf32>
    %48 = arith.addf %45, %47 : vector<2x512xf32>
    %cst_25 = arith.constant 0.000000e+00 : f32
    %49 = vector.broadcast %cst_25 : f32 to vector<2x512xf32>
    %50 = arith.cmpf ogt, %48, %49 : vector<2x512xf32>
    %cst_26 = arith.constant 0.00999999977 : f32
    %51 = vector.broadcast %cst_26 : f32 to vector<2x512xf32>
    %52 = arith.mulf %51, %48 : vector<2x512xf32>
    %53 = arith.select %50, %48, %52 : vector<2x512xi1>, vector<2x512xf32>
    %54 = arith.truncf %53 : vector<2x512xf32> to vector<2x512xbf16>
    %c0_27 = arith.constant 0 : index
    %c0_28 = arith.constant 0 : index
    %55 = vector.load %arg8[%c0_27, %c0_28] : memref<512x128xbf16, #tpu.memory_space<vmem>>, vector<512x128xbf16>
    %cst_29 = arith.constant dense<0.000000e+00> : vector<2x128xf32>
    %56 = tpu.matmul %54, %55, %cst_29 {dimension_numbers = #tpu.dot_dimension_numbers<[1], [0], [0], [1], [0, 0, 1, 1], [], []>} : vector<2x512xbf16>, vector<512x128xbf16>, vector<2x128xf32> -> vector<2x128xf32>
    %c0_30 = arith.constant 0 : index
    %c0_31 = arith.constant 0 : index
    %57 = vector.load %arg9[%c0_30, %c0_31] : memref<1x128xf32, #tpu.memory_space<vmem>>, vector<1x128xf32>
    %58 = vector.broadcast %57 : vector<1x128xf32> to vector<2x128xf32>
    %59 = arith.addf %56, %58 : vector<2x128xf32>
    %cst_32 = arith.constant 0.000000e+00 : f32
    %60 = vector.broadcast %cst_32 : f32 to vector<2x128xf32>
    %61 = arith.cmpf ogt, %59, %60 : vector<2x128xf32>
    %cst_33 = arith.constant 0.00999999977 : f32
    %62 = vector.broadcast %cst_33 : f32 to vector<2x128xf32>
    %63 = arith.mulf %62, %59 : vector<2x128xf32>
    %64 = arith.select %61, %59, %63 : vector<2x128xi1>, vector<2x128xf32>
    %65 = arith.truncf %64 : vector<2x128xf32> to vector<2x128xbf16>
    %c0_34 = arith.constant 0 : index
    %c0_35 = arith.constant 0 : index
    %66 = vector.load %arg10[%c0_34, %c0_35] : memref<128x128xbf16, #tpu.memory_space<vmem>>, vector<128x128xbf16>
    %cst_36 = arith.constant dense<0.000000e+00> : vector<2x128xf32>
    %67 = tpu.matmul %65, %66, %cst_36 {dimension_numbers = #tpu.dot_dimension_numbers<[1], [0], [0], [1], [0, 0, 1, 1], [], []>} : vector<2x128xbf16>, vector<128x128xbf16>, vector<2x128xf32> -> vector<2x128xf32>
    %c0_37 = arith.constant 0 : index
    %c0_38 = arith.constant 0 : index
    %68 = vector.load %arg11[%c0_37, %c0_38] : memref<1x128xf32, #tpu.memory_space<vmem>>, vector<1x128xf32>
    %69 = vector.broadcast %68 : vector<1x128xf32> to vector<2x128xf32>
    %70 = arith.addf %67, %69 : vector<2x128xf32>
    %71 = vector.extract_strided_slice %70 {offsets = [0, 6], sizes = [2, 1], strides = [1, 1]} : vector<2x128xf32> to vector<2x1xf32>
    %cst_39 = arith.constant dense<0.000000e+00> : vector<2xf32>
    %72 = vector.multi_reduction <add>, %70, %cst_39 [1] : vector<2x128xf32> to vector<2xf32>
    %73 = vector.shape_cast %72 : vector<2xf32> to vector<2x1xf32>
    %74 = arith.subf %73, %71 : vector<2x1xf32>
    %75 = vector.broadcast %71 : vector<2x1xf32> to vector<2x128xf32>
    %76 = arith.addf %70, %75 : vector<2x128xf32>
    %cst_40 = arith.constant 0.166666672 : f32
    %77 = vector.broadcast %cst_40 : f32 to vector<2x1xf32>
    %78 = arith.mulf %74, %77 : vector<2x1xf32>
    %79 = vector.broadcast %78 : vector<2x1xf32> to vector<2x128xf32>
    %80 = arith.subf %76, %79 : vector<2x128xf32>
    %c0_41 = arith.constant 0 : index
    %c0_42 = arith.constant 0 : index
    %81 = vector.load %arg12[%c0_41, %c0_42] : memref<2x128xf32, #tpu.memory_space<vmem>>, vector<2x128xf32>
    tpu.vector_store %arg12[%c0_41, %c0_42], %80 {strides = array<i32>} : memref<2x128xf32, #tpu.memory_space<vmem>>, vector<2x128xf32>,
    return
  }
  func.func @transform_0(%arg0: i32) -> (i32, i32) {
    %c0_i32 = arith.constant 0 : i32
    %c0_i32_0 = arith.constant 0 : i32
    return %arg0, %c0_i32 : i32, i32
  }
  func.func @transform_1(%arg0: i32) -> (i32, i32) {
    %c0_i32 = arith.constant 0 : i32
    %c0_i32_0 = arith.constant 0 : i32
    %c0_i32_1 = arith.constant 0 : i32
    return %c0_i32, %c0_i32_0 : i32, i32
  }
  func.func @transform_2(%arg0: i32) -> (i32, i32) {
    %c0_i32 = arith.constant 0 : i32
    %c0_i32_0 = arith.constant 0 : i32
    %c0_i32_1 = arith.constant 0 : i32
    return %c0_i32, %c0_i32_0 : i32, i32
  }
  func.func @transform_3(%arg0: i32) -> (i32, i32) {
    %c0_i32 = arith.constant 0 : i32
    %c0_i32_0 = arith.constant 0 : i32
    %c0_i32_1 = arith.constant 0 : i32
    return %c0_i32, %c0_i32_0 : i32, i32
  }
  func.func @transform_4(%arg0: i32) -> (i32, i32) {
    %c0_i32 = arith.constant 0 : i32
    %c0_i32_0 = arith.constant 0 : i32
    %c0_i32_1 = arith.constant 0 : i32
    return %c0_i32, %c0_i32_0 : i32, i32
  }
  func.func @transform_5(%arg0: i32) -> (i32, i32) {
    %c0_i32 = arith.constant 0 : i32
    %c0_i32_0 = arith.constant 0 : i32
    %c0_i32_1 = arith.constant 0 : i32
    return %c0_i32, %c0_i32_0 : i32, i32
  }
  func.func @transform_6(%arg0: i32) -> (i32, i32) {
    %c0_i32 = arith.constant 0 : i32
    %c0_i32_0 = arith.constant 0 : i32
    %c0_i32_1 = arith.constant 0 : i32
    return %c0_i32, %c0_i32_0 : i32, i32
  }
  func.func @transform_7(%arg0: i32) -> (i32, i32) {
    %c0_i32 = arith.constant 0 : i32
    %c0_i32_0 = arith.constant 0 : i32
    %c0_i32_1 = arith.constant 0 : i32
    return %c0_i32, %c0_i32_0 : i32, i32
  }
  func.func @transform_8(%arg0: i32) -> (i32, i32) {
    %c0_i32 = arith.constant 0 : i32
    %c0_i32_0 = arith.constant 0 : i32
    %c0_i32_1 = arith.constant 0 : i32
    return %c0_i32, %c0_i32_0 : i32, i32
  }
  func.func @transform_9(%arg0: i32) -> (i32, i32) {
    %c0_i32 = arith.constant 0 : i32
    %c0_i32_0 = arith.constant 0 : i32
    %c0_i32_1 = arith.constant 0 : i32
    return %c0_i32, %c0_i32_0 : i32, i32
  }
  func.func @transform_10(%arg0: i32) -> (i32, i32) {
    %c0_i32 = arith.constant 0 : i32
    %c0_i32_0 = arith.constant 0 : i32
    %c0_i32_1 = arith.constant 0 : i32
    return %c0_i32, %c0_i32_0 : i32, i32
  }
  func.func @transform_11(%arg0: i32) -> (i32, i32) {
    %c0_i32 = arith.constant 0 : i32
    %c0_i32_0 = arith.constant 0 : i32
    return %arg0, %c0_i32 : i32, i32
  }
}

</mosaic_0001>

<bundles_post_ra>
// kernel: tpu_custom_call.1
= control target key start
LH: loop header
LB: loop body
LE: loop exit
PB: predicated region body
PF: predicated region fallthrough
CT: control target
= control target key end

     0   :  { %16 = vsyncpa [#allocation3], 0  ;;  %s6462_s0 = inlined_call_operand.hbm [shape: f32[2,1024], index: 0, kind: input, shape index: {}]   ;;  %s6463_s1 = inlined_call_operand.hbm [shape: bf16[1024,512], index: 1, kind: input, shape index: {}]   ;;  %s6464_s2 = inlined_call_operand.hbm [shape: f32[1,512], index: 2, kind: input, shape index: {}]   ;;  %s6465_s3 = inlined_call_operand.hbm [shape: bf16[512,512], index: 3, kind: input, shape index: {}]   ;;  %s6466_s4 = inlined_call_operand.vmem [shape: f32[1,512], index: 4, kind: input, shape index: {}]   ;;  %s6467_s5 = inlined_call_operand.hbm [shape: bf16[512,512], index: 5, kind: input, shape index: {}]   ;;  %s6468_s6 = inlined_call_operand.vmem [shape: f32[1,512], index: 6, kind: input, shape index: {}]   ;;  %s6469_s7 = inlined_call_operand.hbm [shape: bf16[512,128], index: 7, kind: input, shape index: {}]   ;;  %s6470_s8 = inlined_call_operand.vmem [shape: f32[1,128], index: 8, kind: input, shape index: {}]   ;;  %s6471_s9 = inlined_call_operand.hbm [shape: bf16[128,128], index: 9, kind: input, shape index: {}]   ;;  %s6472_s10 = inlined_call_operand.vmem [shape: f32[1,128], index: 10, kind: input, shape index: {}]   ;;  %s6473_s11 = inlined_call_operand.hbm [shape: f32[2,128], index: 11, kind: output, shape index: {}]  }
   0x1   :  { %17 = vsyncpa [#allocation6], 0 }
   0x2   :  { %18 = vsyncpa [#allocation9], 0 }
   0x3   :  { %19 = vsyncpa [#allocation12], 0 }
   0x4   :  { %20 = vsyncpa [#allocation4], 0  ;;  %s6187_s17 = smov [#allocation5]  }
   0x5   :  { %s36_s18 = sshll.u32 %s6187_s17, 4  ;;  %s37_s18 = int_to_ptr.vmem [resolvable:$true] %s36_s18 }
   0x6   :  { %s6025_s19 = scalar_lea.vmem %s37_s18, 32768  ;;  %p6030_p1 = scmp.lt.s32.totalorder %s37_s18, %s37_s18 }
   0x7   :  { %p6026_p0 = scmp.ne.s32.totalorder %s37_s18, %s6025_s19  ;;  %p6031_p2 = scmp.lt.s32.totalorder %s6025_s19, %s6025_s19 }
   0x9   :  { %p6032_p3 = por %p6031_p2, %p6030_p1 }
   0xb   :  { %p6033_p4 = pnand %p6032_p3, %p6026_p0 }
   0xd   :  { %6036 = shalt.err (!%p6033_p4)
}
   0xe   :  { %s6188_s20 = smov 256   ;;  %s6189_s21 = smov 16  }
   0xf   :  { %42 = dma.hbm_to_vmem [thread:$0]  %s6463_s1, 32768, %s37_s18, [#allocation6], %s6188_s20, %s6188_s20, %s6189_s21  }
  0x10   :  { %s6190_s24 = smov [#allocation8]   ;;  %s6191_s26 = smov [#allocation11]  }
  0x11   :  { %s58_s25 = sshll.u32 %s6190_s24, 4  ;;  %s86_s27 = sshll.u32 %s6191_s26, 4  ;;  %s59_s25 = int_to_ptr.vmem [resolvable:$true] %s58_s25  ;;  %s87_s27 = int_to_ptr.vmem [resolvable:$true] %s86_s27 }
  0x12   :  { %s6045_s28 = scalar_lea.vmem %s59_s25, 16384  ;;  %p6050_p6 = scmp.lt.s32.totalorder %s59_s25, %s59_s25 }
  0x13   :  { %p6046_p5 = scmp.ne.s32.totalorder %s59_s25, %s6045_s28  ;;  %p6051_p7 = scmp.lt.s32.totalorder %s6045_s28, %s6045_s28 }
  0x15   :  { %p6052_p8 = por %p6051_p7, %p6050_p6 }
  0x17   :  { %p6053_p9 = pnand %p6052_p8, %p6046_p5 }
  0x19   :  { %6056 = shalt.err (!%p6053_p9)
}
  0x1a   :  { %64 = dma.hbm_to_vmem [thread:$0]  %s6465_s3, 16384, %s59_s25, [#allocation9], %s6188_s20, %s6188_s20, %s6189_s21  }
  0x1b   :  { %s6065_s1 = scalar_lea.vmem %s87_s27, 4096  ;;  %p6070_p11 = scmp.lt.s32.totalorder %s87_s27, %s87_s27 }
  0x1c   :  { %p6066_p10 = scmp.ne.s32.totalorder %s87_s27, %s6065_s1  ;;  %p6071_p12 = scmp.lt.s32.totalorder %s6065_s1, %s6065_s1 }
  0x1e   :  { %p6072_p13 = por %p6071_p12, %p6070_p11 }
  0x20   :  { %p6073_p0 = pnand %p6072_p13, %p6066_p10 }
  0x22   :  { %6076 = shalt.err (!%p6073_p0)
}
  0x23   :  { %s6192_s12 = smov 64   ;;  %s6193_s13 = smov 4  }
  0x24   :  { %92 = dma.hbm_to_vmem [thread:$0]  %s6469_s7, 4096, %s87_s27, [#allocation12], %s6192_s12, %s6192_s12, %s6193_s13  }
  0x25   :  { %s6194_s16 = smov [#allocation2]   ;;  %s6195_s3 = smov [#allocation7]  }
  0x26   :  { %s27_s17 = sshll.u32 %s6194_s16, 4  ;;  %s49_s18 = sshll.u32 %s6195_s3, 4  ;;  %s28_s17 = int_to_ptr.vmem [resolvable:$true] %s27_s17  ;;  %s50_s18 = int_to_ptr.vmem [resolvable:$true] %s49_s18 }
  0x27   :  { %s6085_s19 = scalar_lea.vmem %s28_s17, 256  ;;  %p6090_p2 = scmp.lt.s32.totalorder %s28_s17, %s28_s17 }
  0x28   :  { %p6086_p1 = scmp.ne.s32.totalorder %s28_s17, %s6085_s19  ;;  %p6091_p3 = scmp.lt.s32.totalorder %s6085_s19, %s6085_s19 }
  0x2a   :  { %p6092_p4 = por %p6091_p3, %p6090_p2 }
  0x2c   :  { %p6093_p5 = pnand %p6092_p4, %p6086_p1 }
  0x2e   :  { %6096 = shalt.err (!%p6093_p5)
}
  0x2f   :  { %30 = dma.hbm_to_vmem [thread:$0]  %s6462_s0, 256, %s28_s17, [#allocation3]  }
  0x30   :  { %s6105_s24 = scalar_lea.vmem %s50_s18, 64  ;;  %p6110_p7 = scmp.lt.s32.totalorder %s50_s18, %s50_s18 }
  0x31   :  { %p6106_p6 = scmp.ne.s32.totalorder %s50_s18, %s6105_s24  ;;  %p6111_p8 = scmp.lt.s32.totalorder %s6105_s24, %s6105_s24 }
  0x33   :  { %p6112_p9 = por %p6111_p8, %p6110_p7 }
  0x35   :  { %p6113_p10 = pnand %p6112_p9, %p6106_p6 }
  0x37   :  { %6116 = shalt.err (!%p6113_p10)
}
  0x38   :  { %52 = dma.hbm_to_vmem [thread:$0]  %s6464_s2, 64, %s50_s18, [#allocation6]  }
  0x39   :  { %s6196_s26 = smov [#allocation10]   ;;  %s6197_s28 = smov [#allocation13]  }
  0x3a   :  { %s72_s27 = sshll.u32 %s6196_s26, 4  ;;  %s100_s29 = sshll.u32 %s6197_s28, 4  ;;  %s73_s27 = int_to_ptr.vmem [resolvable:$true] %s72_s27  ;;  %s101_s29 = int_to_ptr.vmem [resolvable:$true] %s100_s29 }
  0x3b   :  { %s6125_s30 = scalar_lea.vmem %s73_s27, 16384  ;;  %p6130_p12 = scmp.lt.s32.totalorder %s73_s27, %s73_s27 }
  0x3c   :  { %p6126_p11 = scmp.ne.s32.totalorder %s73_s27, %s6125_s30  ;;  %p6131_p13 = scmp.lt.s32.totalorder %s6125_s30, %s6125_s30 }
  0x3e   :  { %p6132_p0 = por %p6131_p13, %p6130_p12 }
  0x40   :  { %p6133_p1 = pnand %p6132_p0, %p6126_p11 }
  0x42   :  { %6136 = shalt.err (!%p6133_p1)
}
  0x43   :  { %78 = dma.hbm_to_vmem [thread:$0]  %s6467_s5, 16384, %s73_s27, [#allocation9], %s6188_s20, %s6188_s20, %s6189_s21  }
  0x44   :  { %s6145_s2 = scalar_lea.vmem %s101_s29, 1024  ;;  %p6150_p3 = scmp.lt.s32.totalorder %s101_s29, %s101_s29 }
  0x45   :  { %p6146_p2 = scmp.ne.s32.totalorder %s101_s29, %s6145_s2  ;;  %p6151_p4 = scmp.lt.s32.totalorder %s6145_s2, %s6145_s2 }
  0x47   :  { %p6152_p5 = por %p6151_p4, %p6150_p3 }
  0x49   :  { %p6153_p6 = pnand %p6152_p5, %p6146_p2 }
  0x4b   :  { %6156 = shalt.err (!%p6153_p6)
}
  0x4c   :  { %106 = dma.hbm_to_vmem [thread:$0]  %s6471_s9, 1024, %s101_s29, [#allocation12], %s6192_s12, %s6192_s12, %s6193_s13  }
  0x4d   :  { %6177 = dma.done.wait [#allocation3], 256  }
  0x4e   :  { %6178 = vsyncadd [#allocation3], 4294967040 }
  0x4f   :  { %6179 = dma.done.wait [#allocation6], 32832  }
  0x50   :  { %6180 = vsyncadd [#allocation6], 4294934464 }
  0x51   :  { %6181 = dma.done.wait [#allocation9], 32768  }
  0x52   :  { %6182 = vsyncadd [#allocation9], 4294934528 }
  0x53   :  { %6183 = dma.done.wait [#allocation12], 5120  }
  0x54   :  { %6184 = vsyncadd [#allocation12], 4294962176  ;;  %v5205_v0 = vld [vmem:[#allocation5 + $0xe4] ss:$16 sps:$4 sm:$0xff]   ;;  %v5209_v2 = vld [vmem:[#allocation5 + $0xe0] ss:$16 sps:$4 sm:$0xff]   ;;  %v139_v38 = vlaneseq }
  0x55   :  { %v5207_v1 = vld [vmem:[#allocation5 + $0x2e4] ss:$16 sps:$4 sm:$0xff]   ;;  %1743 = vmatprep.subr.bf16.mxu0 %v5205_v0  ;;  %v5210_v3 = vld [vmem:[#allocation5 + $0x2e0] ss:$16 sps:$4 sm:$0xff]   ;;  %v6198_v36 = vmov 1983009808  }
  0x56   :  { %1784 = vmatprep.subr.bf16.mxu1 %v5207_v1  ;;  %v5211_v4 = vld [vmem:[#allocation5 + $0xc4] ss:$16 sps:$4 sm:$0xff]   ;;  %1744 = vmatpush1.bf16.msra.mxu0 %v5209_v2  ;;  %v5215_v6 = vld [vmem:[#allocation5 + $0xc0] ss:$16 sps:$4 sm:$0xff]   ;;  %v137_v37 = vunpack.c.l.s4 %v6198_v36  ;;  %v6299_v43 = vshrl.u32 %v139_v38, 7  ;;  %vm2083_vm2 = vcmask 1041408  }
  0x57   :  { %1785 = vmatpush1.bf16.msra.mxu1 %v5210_v3  ;;  %v5213_v5 = vld [vmem:[#allocation5 + $0x2c4] ss:$16 sps:$4 sm:$0xff]   ;;  %1745 = vmatprep.subr.bf16.mxu0 %v5211_v4  ;;  %v5216_v7 = vld [vmem:[#allocation5 + $0x2c0] ss:$16 sps:$4 sm:$0xff]   ;;  %vm6200_vm13 = vmmov 0  }
  0x58   :  { %1786 = vmatprep.subr.bf16.mxu1 %v5213_v5  ;;  %v5217_v8 = vld [vmem:[#allocation5 + $0xa4] ss:$16 sps:$4 sm:$0xff]   ;;  %v5221_v10 = vld [vmem:[#allocation5 + $0xa0] ss:$16 sps:$4 sm:$0xff]   ;;  %v138_v42 = vunpack.c.0.s8 %v137_v37 }
  0x59   :  { %v5219_v9 = vld [vmem:[#allocation5 + $0x2a4] ss:$16 sps:$4 sm:$0xff]   ;;  %v5222_v11 = vld [vmem:[#allocation5 + $0x2a0] ss:$16 sps:$4 sm:$0xff]  }
  0x5a   :  { %1746 = vmatpush1.bf16.msra.mxu0 %v5215_v6  ;;  %v5223_v12 = vld [vmem:[#allocation5 + $0x84] ss:$16 sps:$4 sm:$0xff]   ;;  %v5227_v14 = vld [vmem:[#allocation5 + $0x80] ss:$16 sps:$4 sm:$0xff]   ;;  %v6302_v49 = vsub.s32 %v138_v42, %v6299_v43  ;;  %v132_v42 = vld [vmem:[#allocation2 + $0x8] sm:$0xff] }
  0x5b   :  { %1787 = vmatpush1.bf16.msra.mxu1 %v5216_v7  ;;  %1747 = vmatprep.subr.bf16.mxu0 %v5217_v8  ;;  %v5225_v13 = vld [vmem:[#allocation5 + $0x284] ss:$16 sps:$4 sm:$0xff]   ;;  %v5228_v15 = vld [vmem:[#allocation5 + $0x280] ss:$16 sps:$4 sm:$0xff]  }
  0x5c   :  { %1788 = vmatprep.subr.bf16.mxu1 %v5219_v9  ;;  %v5229_v16 = vld [vmem:[#allocation5 + $0x64] ss:$16 sps:$4 sm:$0xff]   ;;  %v5233_v18 = vld [vmem:[#allocation5 + $0x60] ss:$16 sps:$4 sm:$0xff]  }
  0x5d   :  { %v5231_v17 = vld [vmem:[#allocation5 + $0x264] ss:$16 sps:$4 sm:$0xff]   ;;  %v5234_v19 = vld [vmem:[#allocation5 + $0x260] ss:$16 sps:$4 sm:$0xff]  }
  0x5e   :  { %1748 = vmatpush1.bf16.msra.mxu0 %v5221_v10  ;;  %v5235_v20 = vld [vmem:[#allocation5 + $0x44] ss:$16 sps:$4 sm:$0xff]   ;;  %v5239_v22 = vld [vmem:[#allocation5 + $0x40] ss:$16 sps:$4 sm:$0xff]  }
  0x5f   :  { %1789 = vmatpush1.bf16.msra.mxu1 %v5222_v11  ;;  %1749 = vmatprep.subr.bf16.mxu0 %v5223_v12  ;;  %v5237_v21 = vld [vmem:[#allocation5 + $0x244] ss:$16 sps:$4 sm:$0xff]   ;;  %v5240_v23 = vld [vmem:[#allocation5 + $0x240] ss:$16 sps:$4 sm:$0xff]  }
  0x60   :  { %1790 = vmatprep.subr.bf16.mxu1 %v5225_v13  ;;  %v5241_v24 = vld [vmem:[#allocation5 + $0x24] ss:$16 sps:$4 sm:$0xff]   ;;  %v5245_v26 = vld [vmem:[#allocation5 + $0x20] ss:$16 sps:$4 sm:$0xff]  }
  0x61   :  { %v5243_v25 = vld [vmem:[#allocation5 + $0x224] ss:$16 sps:$4 sm:$0xff]   ;;  %v5246_v27 = vld [vmem:[#allocation5 + $0x220] ss:$16 sps:$4 sm:$0xff]  }
  0x62   :  { %1750 = vmatpush1.bf16.msra.mxu0 %v5227_v14  ;;  %v5247_v28 = vld [vmem:[#allocation5 + $0x4] ss:$16 sps:$4 sm:$0xff]   ;;  %v5251_v30 = vld [vmem:[#allocation5] ss:$16 sps:$4 sm:$0xff]  }
  0x63   :  { %1791 = vmatpush1.bf16.msra.mxu1 %v5228_v15  ;;  %1751 = vmatprep.subr.bf16.mxu0 %v5229_v16  ;;  %v5249_v29 = vld [vmem:[#allocation5 + $0x204] ss:$16 sps:$4 sm:$0xff]   ;;  %v5252_v31 = vld [vmem:[#allocation5 + $0x200] ss:$16 sps:$4 sm:$0xff]  }
  0x64   :  { %1792 = vmatprep.subr.bf16.mxu1 %v5231_v17  ;;  %v5253_v32 = vld [vmem:[#allocation5 + $0x1e4] ss:$16 sps:$4 sm:$0xff]   ;;  %v5257_v34 = vld [vmem:[#allocation5 + $0x1e0] ss:$16 sps:$4 sm:$0xff]  }
  0x65   :  { %v5255_v33 = vld [vmem:[#allocation5 + $0x3e4] ss:$16 sps:$4 sm:$0xff]   ;;  %v5258_v35 = vld [vmem:[#allocation5 + $0x3e0] ss:$16 sps:$4 sm:$0xff]  }
  0x66   :  { %1752 = vmatpush1.bf16.msra.mxu0 %v5233_v18  ;;  %v5259_v39 = vld [vmem:[#allocation5 + $0x1c4] ss:$16 sps:$4 sm:$0xff]   ;;  %v5263_v41 = vld [vmem:[#allocation5 + $0x1c0] ss:$16 sps:$4 sm:$0xff]  }
  0x67   :  { %1793 = vmatpush1.bf16.msra.mxu1 %v5234_v19  ;;  %1753 = vmatprep.subr.bf16.mxu0 %v5235_v20  ;;  %v5261_v40 = vld [vmem:[#allocation5 + $0x3c4] ss:$16 sps:$4 sm:$0xff]   ;;  %v5264_v44 = vld [vmem:[#allocation5 + $0x3c0] ss:$16 sps:$4 sm:$0xff]  }
  0x68   :  { %1794 = vmatprep.subr.bf16.mxu1 %v5237_v21  ;;  %v5265_v45 = vld [vmem:[#allocation5 + $0x1a4] ss:$16 sps:$4 sm:$0xff]   ;;  %v5269_v47 = vld [vmem:[#allocation5 + $0x1a0] ss:$16 sps:$4 sm:$0xff]  }
  0x69   :  { %v5267_v46 = vld [vmem:[#allocation5 + $0x3a4] ss:$16 sps:$4 sm:$0xff]   ;;  %v5270_v48 = vld [vmem:[#allocation5 + $0x3a0] ss:$16 sps:$4 sm:$0xff]  }
  0x6a   :  { %1754 = vmatpush1.bf16.msra.mxu0 %v5239_v22  ;;  %v5271_v50 = vld [vmem:[#allocation5 + $0x184] ss:$16 sps:$4 sm:$0xff]   ;;  %v5275_v53 = vld [vmem:[#allocation5 + $0x180] ss:$16 sps:$4 sm:$0xff]  }
  0x6b   :  { %1795 = vmatpush1.bf16.msra.mxu1 %v5240_v23  ;;  %1755 = vmatprep.subr.bf16.mxu0 %v5241_v24  ;;  %v5273_v51 = vld [vmem:[#allocation5 + $0x384] ss:$16 sps:$4 sm:$0xff]   ;;  %v5276_v56 = vld [vmem:[#allocation5 + $0x380] ss:$16 sps:$4 sm:$0xff]  }
  0x6c   :  { %1796 = vmatprep.subr.bf16.mxu1 %v5243_v25  ;;  %v131_v52 = vld [vmem:[#allocation2] sm:$0xff] }
  0x6d   :  { %v142_v54 = vrot.slane %v131_v52, %v6302_v49  ;;  %v135_v55 = vcombine.high %v131_v52, %v131_v52  ;;  %v5277_v57 = vld [vmem:[#allocation5 + $0x164] ss:$16 sps:$4 sm:$0xff]   ;;  %v5281_v61 = vld [vmem:[#allocation5 + $0x160] ss:$16 sps:$4 sm:$0xff]  }
  0x6e   :  { %1756 = vmatpush1.bf16.msra.mxu0 %v5245_v26  ;;  %v5279_v58 = vld [vmem:[#allocation5 + $0x364] ss:$16 sps:$4 sm:$0xff]   ;;  %v5282_v0 = vld [vmem:[#allocation5 + $0x360] ss:$16 sps:$4 sm:$0xff]  }
  0x6f   :  { %1797 = vmatpush1.bf16.msra.mxu1 %v5246_v27  ;;  %1757 = vmatprep.subr.bf16.mxu0 %v5247_v28  ;;  %v150_v59 = vcombine.high %v142_v54, %v142_v54  ;;  %v149_v60 = vrot.slane %v135_v55, %v6302_v49  ;;  %v5283_v1 = vld [vmem:[#allocation5 + $0x144] ss:$16 sps:$4 sm:$0xff]   ;;  %v5287_v4 = vld [vmem:[#allocation5 + $0x140] ss:$16 sps:$4 sm:$0xff]   ;;  %v6312_v16 = vpack.c.bf16 %v142_v54, %v142_v54 }
  0x70   :  { %1798 = vmatprep.subr.bf16.mxu1 %v5249_v29  ;;  %v5285_v2 = vld [vmem:[#allocation5 + $0x344] ss:$16 sps:$4 sm:$0xff]   ;;  %v5288_v5 = vld [vmem:[#allocation5 + $0x340] ss:$16 sps:$4 sm:$0xff]  }
  0x71   :  { %v6306_v62 = vpack.c.bf16 %v150_v59, %v150_v59  ;;  %v151_v63 = vcombine.high %v149_v60, %v149_v60  ;;  %v5289_v6 = vld [vmem:[#allocation5 + $0x124] ss:$16 sps:$4 sm:$0xff]   ;;  %v5293_v8 = vld [vmem:[#allocation5 + $0x120] ss:$16 sps:$4 sm:$0xff]   ;;  %v6314_v17 = vpack.c.bf16 %v149_v60, %v149_v60 }
  0x72   :  { %1758 = vmatpush1.bf16.msra.mxu0 %v5251_v30  ;;  %v5291_v7 = vld [vmem:[#allocation5 + $0x324] ss:$16 sps:$4 sm:$0xff]   ;;  %v5294_v9 = vld [vmem:[#allocation5 + $0x320] ss:$16 sps:$4 sm:$0xff]  }
  0x73   :  { %1799 = vmatpush1.bf16.msra.mxu1 %v5252_v31  ;;  %1759 = vmatprep.subr.bf16.mxu0 %v5253_v32  ;;  %v6308_v3 = vpack.c.bf16 %v151_v63, %v151_v63  ;;  %v5295_v10 = vld [vmem:[#allocation5 + $0x104] ss:$16 sps:$4 sm:$0xff]   ;;  %v5299_v12 = vld [vmem:[#allocation5 + $0x100] ss:$16 sps:$4 sm:$0xff]  }
  0x74   :  { %1800 = vmatprep.subr.bf16.mxu1 %v5255_v33  ;;  %1775 = vmatprep.mubr.bf16.mxu0 %v6306_v62  ;;  %v5297_v11 = vld [vmem:[#allocation5 + $0x304] ss:$16 sps:$4 sm:$0xff]   ;;  %v5300_v13 = vld [vmem:[#allocation5 + $0x300] ss:$16 sps:$4 sm:$0xff]  }
  0x75   :  { %1816 = vmatprep.mubr.bf16.mxu1 %v6308_v3  ;;  %v5304_v14 = vld [vmem:[#allocation5 + $0x4e4] ss:$16 sps:$4 sm:$0xff]   ;;  %v5302_v18 = vld [vmem:[#allocation5 + $0x4e0] ss:$16 sps:$4 sm:$0xff]  }
  0x76   :  { %1760 = vmatpush2.bf16.msra.mxu0 %v5257_v34  ;;  %v5307_v15 = vld [vmem:[#allocation5 + $0x6e4] ss:$16 sps:$4 sm:$0xff]   ;;  %v5305_v19 = vld [vmem:[#allocation5 + $0x6e0] ss:$16 sps:$4 sm:$0xff]  }
  0x77   :  { %1801 = vmatpush2.bf16.msra.mxu1 %v5258_v35  ;;  %1761 = vmatprep.subr.bf16.mxu0 %v5259_v39  ;;  %v5310_v20 = vld [vmem:[#allocation5 + $0x4c4] ss:$16 sps:$4 sm:$0xff]   ;;  %v5308_v22 = vld [vmem:[#allocation5 + $0x4c0] ss:$16 sps:$4 sm:$0xff]  }
  0x78   :  { %1802 = vmatprep.subr.bf16.mxu1 %v5261_v40  ;;  %v5313_v21 = vld [vmem:[#allocation5 + $0x6c4] ss:$16 sps:$4 sm:$0xff]   ;;  %v5311_v23 = vld [vmem:[#allocation5 + $0x6c0] ss:$16 sps:$4 sm:$0xff]  }
  0x79   :  { %v5316_v24 = vld [vmem:[#allocation5 + $0x4a4] ss:$16 sps:$4 sm:$0xff]   ;;  %v5314_v26 = vld [vmem:[#allocation5 + $0x4a0] ss:$16 sps:$4 sm:$0xff]  }
  0x7a   :  { %1762 = vmatpush2.bf16.msra.mxu0 %v5263_v41  ;;  %v5319_v25 = vld [vmem:[#allocation5 + $0x6a4] ss:$16 sps:$4 sm:$0xff]   ;;  %v5317_v27 = vld [vmem:[#allocation5 + $0x6a0] ss:$16 sps:$4 sm:$0xff]  }
  0x7b   :  { %1803 = vmatpush2.bf16.msra.mxu1 %v5264_v44  ;;  %1763 = vmatprep.subr.bf16.mxu0 %v5265_v45  ;;  %v5322_v28 = vld [vmem:[#allocation5 + $0x484] ss:$16 sps:$4 sm:$0xff]   ;;  %v5320_v30 = vld [vmem:[#allocation5 + $0x480] ss:$16 sps:$4 sm:$0xff]   ;;  %v6319_v44 = vrot.slane %v132_v42, %v6302_v49  ;;  %v152_v45 = vcombine.high %v132_v42, %v132_v42  ;;  %v5414_v42 = vld [vmem:[#allocation5 + $0x2a8] ss:$16 sps:$4 sm:$0xff]  }
  0x7c   :  { %1804 = vmatprep.subr.bf16.mxu1 %v5267_v46  ;;  %v5325_v29 = vld [vmem:[#allocation5 + $0x684] ss:$16 sps:$4 sm:$0xff]   ;;  %v5323_v31 = vld [vmem:[#allocation5 + $0x680] ss:$16 sps:$4 sm:$0xff]  }
  0x7d   :  { %v5328_v32 = vld [vmem:[#allocation5 + $0x464] ss:$16 sps:$4 sm:$0xff]   ;;  %v5326_v34 = vld [vmem:[#allocation5 + $0x460] ss:$16 sps:$4 sm:$0xff]  }
  0x7e   :  { %1764 = vmatpush2.bf16.msra.mxu0 %v5269_v47  ;;  %v5331_v33 = vld [vmem:[#allocation5 + $0x664] ss:$16 sps:$4 sm:$0xff]   ;;  %v5329_v35 = vld [vmem:[#allocation5 + $0x660] ss:$16 sps:$4 sm:$0xff]  }
  0x7f   :  { %1805 = vmatpush2.bf16.msra.mxu1 %v5270_v48  ;;  %1765 = vmatprep.subr.bf16.mxu0 %v5271_v50  ;;  %v5334_v36 = vld [vmem:[#allocation5 + $0x444] ss:$16 sps:$4 sm:$0xff]   ;;  %v5332_v38 = vld [vmem:[#allocation5 + $0x440] ss:$16 sps:$4 sm:$0xff]   ;;  %v167_v48 = vcombine.high %v6319_v44, %v6319_v44  ;;  %v6324_v50 = vrot.slane %v152_v45, %v6302_v49  ;;  %v5422_v45 = vld [vmem:[#allocation5 + $0x28c] ss:$16 sps:$4 sm:$0xff]  }
  0x80   :  { %1806 = vmatprep.subr.bf16.mxu1 %v5273_v51  ;;  %v5337_v37 = vld [vmem:[#allocation5 + $0x644] ss:$16 sps:$4 sm:$0xff]   ;;  %v5335_v39 = vld [vmem:[#allocation5 + $0x640] ss:$16 sps:$4 sm:$0xff]  }
  0x81   :  { %v5340_v40 = vld [vmem:[#allocation5 + $0x424] ss:$16 sps:$4 sm:$0xff]   ;;  %v5338_v46 = vld [vmem:[#allocation5 + $0x420] ss:$16 sps:$4 sm:$0xff]   ;;  %v168_v54 = vcombine.high %v6324_v50, %v6324_v50 }
  0x82   :  { %1766 = vmatpush2.bf16.msra.mxu0 %v5275_v53  ;;  %v5343_v41 = vld [vmem:[#allocation5 + $0x624] ss:$16 sps:$4 sm:$0xff]   ;;  %v5341_v47 = vld [vmem:[#allocation5 + $0x620] ss:$16 sps:$4 sm:$0xff]   ;;  %v6326_v53 = vpack.c.bf16 %v167_v48, %v167_v48  ;;  %v5425_v48 = vld [vmem:[#allocation5 + $0x6c] ss:$16 sps:$4 sm:$0xff]  }
  0x83   :  { %1807 = vmatpush2.bf16.msra.mxu1 %v5276_v56  ;;  %1767 = vmatprep.subr.bf16.mxu0 %v5277_v57  ;;  %v5346_v51 = vld [vmem:[#allocation5 + $0x404] ss:$16 sps:$4 sm:$0xff]   ;;  %v5344_v55 = vld [vmem:[#allocation5 + $0x400] ss:$16 sps:$4 sm:$0xff]   ;;  %v6330_v57 = vpack.c.bf16 %v168_v54, %v168_v54  ;;  %v5429_v54 = vld [vmem:[#allocation5 + $0x48] ss:$16 sps:$4 sm:$0xff]  }
  0x84   :  { %1808 = vmatprep.subr.bf16.mxu1 %v5279_v58  ;;  %v5349_v52 = vld [vmem:[#allocation5 + $0x604] ss:$16 sps:$4 sm:$0xff]   ;;  %v5347_v56 = vld [vmem:[#allocation5 + $0x600] ss:$16 sps:$4 sm:$0xff]  }
  0x85   :  { %v5352_v58 = vld [vmem:[#allocation5 + $0x5e4] ss:$16 sps:$4 sm:$0xff]   ;;  %v5350_v59 = vld [vmem:[#allocation5 + $0x5e0] ss:$16 sps:$4 sm:$0xff]  }
  0x86   :  { %1768 = vmatpush2.bf16.msra.mxu0 %v5281_v61  ;;  %v5355_v49 = vld [vmem:[#allocation5 + $0x7e4] ss:$16 sps:$4 sm:$0xff]   ;;  %v5353_v60 = vld [vmem:[#allocation5 + $0x7e0] ss:$16 sps:$4 sm:$0xff]  }
  0x87   :  { %1809 = vmatpush2.bf16.msra.mxu1 %v5282_v0  ;;  %1769 = vmatprep.subr.bf16.mxu0 %v5283_v1  ;;  %v5358_v61 = vld [vmem:[#allocation5 + $0x5c4] ss:$16 sps:$4 sm:$0xff]   ;;  %v5356_v0 = vld [vmem:[#allocation5 + $0x5c0] ss:$16 sps:$4 sm:$0xff]  }
  0x88   :  { %1810 = vmatprep.subr.bf16.mxu1 %v5285_v2  ;;  %v5361_v63 = vld [vmem:[#allocation5 + $0x7c4] ss:$16 sps:$4 sm:$0xff]   ;;  %v5359_v1 = vld [vmem:[#allocation5 + $0x7c0] ss:$16 sps:$4 sm:$0xff]  }
  0x89   :  { %v5364_v2 = vld [vmem:[#allocation5 + $0x5a4] ss:$16 sps:$4 sm:$0xff]  }
  0x8a   :  { %1770 = vmatpush2.bf16.msra.mxu0 %v5287_v4  ;;  %v5367_v4 = vld [vmem:[#allocation5 + $0x7a4] ss:$16 sps:$4 sm:$0xff]  }
  0x8b   :  { %1811 = vmatpush2.bf16.msra.mxu1 %v5288_v5  ;;  %1771 = vmatprep.subr.bf16.mxu0 %v5289_v6  ;;  %v5362_v5 = vld [vmem:[#allocation5 + $0x5a0] ss:$16 sps:$4 sm:$0xff]  }
  0x8c   :  { %1812 = vmatprep.subr.bf16.mxu1 %v5291_v7  ;;  %v5365_v6 = vld [vmem:[#allocation5 + $0x7a0] ss:$16 sps:$4 sm:$0xff]   ;;  %v5370_v7 = vld [vmem:[#allocation5 + $0x584] ss:$16 sps:$4 sm:$0xff]  }
  0x8e   :  { %1772 = vmatpush2.bf16.msra.mxu0 %v5293_v8  ;;  %v5373_v8 = vld [vmem:[#allocation5 + $0x784] ss:$16 sps:$4 sm:$0xff]  }
  0x8f   :  { %1813 = vmatpush2.bf16.msra.mxu1 %v5294_v9  ;;  %1773 = vmatprep.subr.bf16.mxu0 %v5295_v10  ;;  %v5368_v9 = vld [vmem:[#allocation5 + $0x580] ss:$16 sps:$4 sm:$0xff]  }
  0x90   :  { %1814 = vmatprep.subr.bf16.mxu1 %v5297_v11  ;;  %v5371_v10 = vld [vmem:[#allocation5 + $0x780] ss:$16 sps:$4 sm:$0xff]   ;;  %v5376_v11 = vld [vmem:[#allocation5 + $0x564] ss:$16 sps:$4 sm:$0xff]  }
  0x92   :  { %1774 = vmatpush2.bf16.msra.mxu0 %v5299_v12  ;;  %v5379_v12 = vld [vmem:[#allocation5 + $0x764] ss:$16 sps:$4 sm:$0xff]  }
  0x93   :  { %1815 = vmatpush2.bf16.msra.mxu1 %v5300_v13  ;;  %1825 = vmatprep.subr.bf16.mxu0 %v5304_v14  ;;  %v5374_v13 = vld [vmem:[#allocation5 + $0x560] ss:$16 sps:$4 sm:$0xff]  }
  0x94   :  { %1866 = vmatprep.subr.bf16.mxu1 %v5307_v15  ;;  %v5377_v14 = vld [vmem:[#allocation5 + $0x760] ss:$16 sps:$4 sm:$0xff]   ;;  %v5382_v15 = vld [vmem:[#allocation5 + $0x544] ss:$16 sps:$4 sm:$0xff]  }
  0x95   :  { %1776 = vmatmul.mubr.bf16.vlgmr.msra.gmra.mxu0 %v6312_v16 }
  0x96   :  { %1817 = vmatmul.mubr.bf16.vlgmr.msra.gmra.mxu1 %v6314_v17  ;;  %1826 = vmatpush1.bf16.msra.mxu0 %v5302_v18  ;;  %v5385_v18 = vld [vmem:[#allocation5 + $0x744] ss:$16 sps:$4 sm:$0xff]  }
  0x97   :  { %1867 = vmatpush1.bf16.msra.mxu1 %v5305_v19  ;;  %1827 = vmatprep.subr.bf16.mxu0 %v5310_v20  ;;  %v5380_v19 = vld [vmem:[#allocation5 + $0x540] ss:$16 sps:$4 sm:$0xff]  }
  0x98   :  { %1868 = vmatprep.subr.bf16.mxu1 %v5313_v21  ;;  %1857 = vmatprep.mubr.bf16.mxu0 %v6326_v53  ;;  %v5383_v20 = vld [vmem:[#allocation5 + $0x740] ss:$16 sps:$4 sm:$0xff]   ;;  %v5388_v21 = vld [vmem:[#allocation5 + $0x524] ss:$16 sps:$4 sm:$0xff]  }
  0x99   :  { %1898 = vmatprep.mubr.bf16.mxu1 %v6330_v57 }
  0x9a   :  { %1828 = vmatpush1.bf16.msra.mxu0 %v5308_v22  ;;  %v5391_v22 = vld [vmem:[#allocation5 + $0x724] ss:$16 sps:$4 sm:$0xff]  }
  0x9b   :  { %1869 = vmatpush1.bf16.msra.mxu1 %v5311_v23  ;;  %1829 = vmatprep.subr.bf16.mxu0 %v5316_v24  ;;  %v5386_v23 = vld [vmem:[#allocation5 + $0x520] ss:$16 sps:$4 sm:$0xff]  }
  0x9c   :  { %1870 = vmatprep.subr.bf16.mxu1 %v5319_v25  ;;  %v5389_v24 = vld [vmem:[#allocation5 + $0x720] ss:$16 sps:$4 sm:$0xff]   ;;  %v5394_v25 = vld [vmem:[#allocation5 + $0x504] ss:$16 sps:$4 sm:$0xff]  }
  0x9e   :  { %1830 = vmatpush1.bf16.msra.mxu0 %v5314_v26  ;;  %v5397_v26 = vld [vmem:[#allocation5 + $0x704] ss:$16 sps:$4 sm:$0xff]  }
  0x9f   :  { %1871 = vmatpush1.bf16.msra.mxu1 %v5317_v27  ;;  %1831 = vmatprep.subr.bf16.mxu0 %v5322_v28  ;;  %v5392_v27 = vld [vmem:[#allocation5 + $0x500] ss:$16 sps:$4 sm:$0xff]  }
  0xa0   :  { %1872 = vmatprep.subr.bf16.mxu1 %v5325_v29  ;;  %v5395_v28 = vld [vmem:[#allocation5 + $0x700] ss:$16 sps:$4 sm:$0xff]   ;;  %v5401_v29 = vld [vmem:[#allocation5 + $0xec] ss:$16 sps:$4 sm:$0xff]  }
  0xa2   :  { %1832 = vmatpush1.bf16.msra.mxu0 %v5320_v30  ;;  %v5404_v30 = vld [vmem:[#allocation5 + $0x2ec] ss:$16 sps:$4 sm:$0xff]  }
  0xa3   :  { %1873 = vmatpush1.bf16.msra.mxu1 %v5323_v31  ;;  %1833 = vmatprep.subr.bf16.mxu0 %v5328_v32  ;;  %v6336_v31 = vpack.c.bf16 %v6319_v44, %v6319_v44  ;;  %v6340_v32 = vpack.c.bf16 %v6324_v50, %v6324_v50  ;;  %v5419_v44 = vld [vmem:[#allocation5 + $0x8c] ss:$16 sps:$4 sm:$0xff]  }
  0xa4   :  { %1874 = vmatprep.subr.bf16.mxu1 %v5331_v33  ;;  %v5399_v33 = vld [vmem:[#allocation5 + $0xe8] ss:$16 sps:$4 sm:$0xff]   ;;  %v5428_v50 = vld [vmem:[#allocation5 + $0x26c] ss:$16 sps:$4 sm:$0xff]  }
  0xa6   :  { %1834 = vmatpush1.bf16.msra.mxu0 %v5326_v34  ;;  %v5402_v34 = vld [vmem:[#allocation5 + $0x2e8] ss:$16 sps:$4 sm:$0xff]  }
  0xa7   :  { %1875 = vmatpush1.bf16.msra.mxu1 %v5329_v35  ;;  %1835 = vmatprep.subr.bf16.mxu0 %v5334_v36  ;;  %v5407_v35 = vld [vmem:[#allocation5 + $0xcc] ss:$16 sps:$4 sm:$0xff]  }
  0xa8   :  { %1876 = vmatprep.subr.bf16.mxu1 %v5337_v37  ;;  %v5410_v36 = vld [vmem:[#allocation5 + $0x2cc] ss:$16 sps:$4 sm:$0xff]   ;;  %v5405_v37 = vld [vmem:[#allocation5 + $0xc8] ss:$16 sps:$4 sm:$0xff]  }
  0xaa   :  { %1836 = vmatpush1.bf16.msra.mxu0 %v5332_v38  ;;  %v5408_v38 = vld [vmem:[#allocation5 + $0x2c8] ss:$16 sps:$4 sm:$0xff]  }
  0xab   :  { %1877 = vmatpush1.bf16.msra.mxu1 %v5335_v39  ;;  %1837 = vmatprep.subr.bf16.mxu0 %v5340_v40  ;;  %v5413_v39 = vld [vmem:[#allocation5 + $0xac] ss:$16 sps:$4 sm:$0xff]  }
  0xac   :  { %1878 = vmatprep.subr.bf16.mxu1 %v5343_v41  ;;  %v5416_v40 = vld [vmem:[#allocation5 + $0x2ac] ss:$16 sps:$4 sm:$0xff]   ;;  %v5411_v41 = vld [vmem:[#allocation5 + $0xa8] ss:$16 sps:$4 sm:$0xff]  }
  0xae   :  { %1838 = vmatpush1.bf16.msra.mxu0 %v5338_v46  ;;  %v5417_v46 = vld [vmem:[#allocation5 + $0x88] ss:$16 sps:$4 sm:$0xff]  }
  0xaf   :  { %1879 = vmatpush1.bf16.msra.mxu1 %v5341_v47  ;;  %1839 = vmatprep.subr.bf16.mxu0 %v5346_v51  ;;  %v5420_v47 = vld [vmem:[#allocation5 + $0x288] ss:$16 sps:$4 sm:$0xff]   ;;  %v5431_v51 = vld [vmem:[#allocation5 + $0x4c] ss:$16 sps:$4 sm:$0xff]  }
  0xb0   :  { %1880 = vmatprep.subr.bf16.mxu1 %v5349_v52  ;;  %v5434_v52 = vld [vmem:[#allocation5 + $0x24c] ss:$16 sps:$4 sm:$0xff]  }
  0xb2   :  { %1840 = vmatpush1.bf16.msra.mxu0 %v5344_v55  ;;  %v5432_v55 = vld [vmem:[#allocation5 + $0x248] ss:$16 sps:$4 sm:$0xff]  }
  0xb3   :  { %1881 = vmatpush1.bf16.msra.mxu1 %v5347_v56  ;;  %1841 = vmatprep.subr.bf16.mxu0 %v5352_v58  ;;  %v5437_v56 = vld [vmem:[#allocation5 + $0x2c] ss:$16 sps:$4 sm:$0xff]  }
  0xb4   :  { %1882 = vmatprep.subr.bf16.mxu1 %v5355_v49  ;;  %v5440_v58 = vld [vmem:[#allocation5 + $0x22c] ss:$16 sps:$4 sm:$0xff]   ;;  %v5435_v49 = vld [vmem:[#allocation5 + $0x28] ss:$16 sps:$4 sm:$0xff]  }
  0xb6   :  { %1842 = vmatpush2.bf16.msra.mxu0 %v5350_v59  ;;  %v5438_v59 = vld [vmem:[#allocation5 + $0x228] ss:$16 sps:$4 sm:$0xff]  }
  0xb7   :  { %1883 = vmatpush2.bf16.msra.mxu1 %v5353_v60  ;;  %1843 = vmatprep.subr.bf16.mxu0 %v5358_v61  ;;  %v5443_v60 = vld [vmem:[#allocation5 + $0xc] ss:$16 sps:$4 sm:$0xff]  }
  0xb8   :  { %1884 = vmatprep.subr.bf16.mxu1 %v5361_v63  ;;  %v5446_v61 = vld [vmem:[#allocation5 + $0x20c] ss:$16 sps:$4 sm:$0xff]   ;;  %v5441_v63 = vld [vmem:[#allocation5 + $0x8] ss:$16 sps:$4 sm:$0xff]  }
  0xba   :  { %1844 = vmatpush2.bf16.msra.mxu0 %v5356_v0  ;;  %v5444_v0 = vld [vmem:[#allocation5 + $0x208] ss:$16 sps:$4 sm:$0xff]  }
  0xbb   :  { %1885 = vmatpush2.bf16.msra.mxu1 %v5359_v1  ;;  %1845 = vmatprep.subr.bf16.mxu0 %v5364_v2  ;;  %v5449_v1 = vld [vmem:[#allocation5 + $0x1ec] ss:$16 sps:$4 sm:$0xff]  }
  0xbc   :  { %1886 = vmatprep.subr.bf16.mxu1 %v5367_v4  ;;  %v5452_v2 = vld [vmem:[#allocation5 + $0x3ec] ss:$16 sps:$4 sm:$0xff]   ;;  %v5447_v4 = vld [vmem:[#allocation5 + $0x1e8] ss:$16 sps:$4 sm:$0xff]  }
  0xbe   :  { %1846 = vmatpush2.bf16.msra.mxu0 %v5362_v5  ;;  %v5450_v5 = vld [vmem:[#allocation5 + $0x3e8] ss:$16 sps:$4 sm:$0xff]  }
  0xbf   :  { %1887 = vmatpush2.bf16.msra.mxu1 %v5365_v6  ;;  %1847 = vmatprep.subr.bf16.mxu0 %v5370_v7  ;;  %v5455_v6 = vld [vmem:[#allocation5 + $0x1cc] ss:$16 sps:$4 sm:$0xff]  }
  0xc0   :  { %1888 = vmatprep.subr.bf16.mxu1 %v5373_v8  ;;  %v5458_v7 = vld [vmem:[#allocation5 + $0x3cc] ss:$16 sps:$4 sm:$0xff]   ;;  %v5453_v8 = vld [vmem:[#allocation5 + $0x1c8] ss:$16 sps:$4 sm:$0xff]  }
  0xc2   :  { %1848 = vmatpush2.bf16.msra.mxu0 %v5368_v9  ;;  %v5456_v9 = vld [vmem:[#allocation5 + $0x3c8] ss:$16 sps:$4 sm:$0xff]  }
  0xc3   :  { %1889 = vmatpush2.bf16.msra.mxu1 %v5371_v10  ;;  %1849 = vmatprep.subr.bf16.mxu0 %v5376_v11  ;;  %v5461_v10 = vld [vmem:[#allocation5 + $0x1ac] ss:$16 sps:$4 sm:$0xff]  }
  0xc4   :  { %1890 = vmatprep.subr.bf16.mxu1 %v5379_v12  ;;  %v5464_v11 = vld [vmem:[#allocation5 + $0x3ac] ss:$16 sps:$4 sm:$0xff]   ;;  %v5459_v12 = vld [vmem:[#allocation5 + $0x1a8] ss:$16 sps:$4 sm:$0xff]  }
  0xc6   :  { %1850 = vmatpush2.bf16.msra.mxu0 %v5374_v13  ;;  %v5462_v13 = vld [vmem:[#allocation5 + $0x3a8] ss:$16 sps:$4 sm:$0xff]  }
  0xc7   :  { %1891 = vmatpush2.bf16.msra.mxu1 %v5377_v14  ;;  %1851 = vmatprep.subr.bf16.mxu0 %v5382_v15  ;;  %v5467_v14 = vld [vmem:[#allocation5 + $0x18c] ss:$16 sps:$4 sm:$0xff]  }
  0xc8   :  { %1892 = vmatprep.subr.bf16.mxu1 %v5385_v18  ;;  %v5470_v15 = vld [vmem:[#allocation5 + $0x38c] ss:$16 sps:$4 sm:$0xff]   ;;  %v5465_v18 = vld [vmem:[#allocation5 + $0x188] ss:$16 sps:$4 sm:$0xff]  }
  0xca   :  { %1852 = vmatpush2.bf16.msra.mxu0 %v5380_v19  ;;  %v5468_v19 = vld [vmem:[#allocation5 + $0x388] ss:$16 sps:$4 sm:$0xff]  }
  0xcb   :  { %1893 = vmatpush2.bf16.msra.mxu1 %v5383_v20  ;;  %1853 = vmatprep.subr.bf16.mxu0 %v5388_v21  ;;  %v5473_v20 = vld [vmem:[#allocation5 + $0x16c] ss:$16 sps:$4 sm:$0xff]  }
  0xcc   :  { %1894 = vmatprep.subr.bf16.mxu1 %v5391_v22  ;;  %v5476_v21 = vld [vmem:[#allocation5 + $0x36c] ss:$16 sps:$4 sm:$0xff]   ;;  %v5471_v22 = vld [vmem:[#allocation5 + $0x168] ss:$16 sps:$4 sm:$0xff]  }
  0xce   :  { %1854 = vmatpush2.bf16.msra.mxu0 %v5386_v23  ;;  %v5474_v23 = vld [vmem:[#allocation5 + $0x368] ss:$16 sps:$4 sm:$0xff]  }
  0xcf   :  { %1895 = vmatpush2.bf16.msra.mxu1 %v5389_v24  ;;  %1855 = vmatprep.subr.bf16.mxu0 %v5394_v25  ;;  %v5479_v24 = vld [vmem:[#allocation5 + $0x14c] ss:$16 sps:$4 sm:$0xff]  }
  0xd0   :  { %1896 = vmatprep.subr.bf16.mxu1 %v5397_v26  ;;  %v5482_v25 = vld [vmem:[#allocation5 + $0x34c] ss:$16 sps:$4 sm:$0xff]   ;;  %v5477_v26 = vld [vmem:[#allocation5 + $0x148] ss:$16 sps:$4 sm:$0xff]  }
  0xd2   :  { %1856 = vmatpush2.bf16.msra.mxu0 %v5392_v27  ;;  %v5480_v27 = vld [vmem:[#allocation5 + $0x348] ss:$16 sps:$4 sm:$0xff]  }
  0xd3   :  { %1897 = vmatpush2.bf16.msra.mxu1 %v5395_v28  ;;  %1907 = vmatprep.subr.bf16.mxu0 %v5401_v29  ;;  %v5485_v28 = vld [vmem:[#allocation5 + $0x12c] ss:$16 sps:$4 sm:$0xff]  }
  0xd4   :  { %1948 = vmatprep.subr.bf16.mxu1 %v5404_v30  ;;  %v5488_v29 = vld [vmem:[#allocation5 + $0x32c] ss:$16 sps:$4 sm:$0xff]   ;;  %v5483_v30 = vld [vmem:[#allocation5 + $0x128] ss:$16 sps:$4 sm:$0xff]  }
  0xd5   :  { %1858 = vmatmul.mubr.bf16.vlgmr.msra.gmra.mxu0 %v6336_v31 }
  0xd6   :  { %1899 = vmatmul.mubr.bf16.vlgmr.msra.gmra.mxu1 %v6340_v32  ;;  %1908 = vmatpush1.bf16.msra.mxu0 %v5399_v33  ;;  %v5486_v33 = vld [vmem:[#allocation5 + $0x328] ss:$16 sps:$4 sm:$0xff]  }
  0xd7   :  { %1949 = vmatpush1.bf16.msra.mxu1 %v5402_v34  ;;  %1909 = vmatprep.subr.bf16.mxu0 %v5407_v35  ;;  %v5491_v34 = vld [vmem:[#allocation5 + $0x10c] ss:$16 sps:$4 sm:$0xff]  }
  0xd8   :  { %1950 = vmatprep.subr.bf16.mxu1 %v5410_v36  ;;  %1939 = vmatprep.mubr.bf16.mxu0 %v6306_v62  ;;  %v5423_v62 = vld [vmem:[#allocation5 + $0x68] ss:$16 sps:$4 sm:$0xff]   ;;  %v5494_v35 = vld [vmem:[#allocation5 + $0x30c] ss:$16 sps:$4 sm:$0xff]  }
  0xd9   :  { %1980 = vmatprep.mubr.bf16.mxu1 %v6308_v3  ;;  %v5426_v3 = vld [vmem:[#allocation5 + $0x268] ss:$16 sps:$4 sm:$0xff]  }
  0xda   :  { %1910 = vmatpush1.bf16.msra.mxu0 %v5405_v37  ;;  %v5489_v36 = vld [vmem:[#allocation5 + $0x108] ss:$16 sps:$4 sm:$0xff]  }
  0xdb   :  { %1951 = vmatpush1.bf16.msra.mxu1 %v5408_v38  ;;  %1911 = vmatprep.subr.bf16.mxu0 %v5413_v39  ;;  %v5492_v37 = vld [vmem:[#allocation5 + $0x308] ss:$16 sps:$4 sm:$0xff]   ;;  %v5497_v38 = vld [vmem:[#allocation5 + $0x4ec] ss:$16 sps:$4 sm:$0xff]  }
  0xdc   :  { %1952 = vmatprep.subr.bf16.mxu1 %v5416_v40  ;;  %v5500_v39 = vld [vmem:[#allocation5 + $0x6ec] ss:$16 sps:$4 sm:$0xff]   ;;  %v5495_v40 = vld [vmem:[#allocation5 + $0x4e8] ss:$16 sps:$4 sm:$0xff]  }
  0xde   :  { %1912 = vmatpush1.bf16.msra.mxu0 %v5411_v41  ;;  %v5498_v41 = vld [vmem:[#allocation5 + $0x6e8] ss:$16 sps:$4 sm:$0xff]  }
  0xdf   :  { %1953 = vmatpush1.bf16.msra.mxu1 %v5414_v42  ;;  %1913 = vmatprep.subr.bf16.mxu0 %v5419_v44  ;;  %v5503_v42 = vld [vmem:[#allocation5 + $0x4cc] ss:$16 sps:$4 sm:$0xff]  }
  0xe0   :  { %1954 = vmatprep.subr.bf16.mxu1 %v5422_v45  ;;  %v5506_v44 = vld [vmem:[#allocation5 + $0x6cc] ss:$16 sps:$4 sm:$0xff]   ;;  %v5501_v45 = vld [vmem:[#allocation5 + $0x4c8] ss:$16 sps:$4 sm:$0xff]  }
  0xe2   :  { %1914 = vmatpush1.bf16.msra.mxu0 %v5417_v46  ;;  %v5504_v46 = vld [vmem:[#allocation5 + $0x6c8] ss:$16 sps:$4 sm:$0xff]  }
  0xe3   :  { %1955 = vmatpush1.bf16.msra.mxu1 %v5420_v47  ;;  %1915 = vmatprep.subr.bf16.mxu0 %v5425_v48  ;;  %v5509_v47 = vld [vmem:[#allocation5 + $0x4ac] ss:$16 sps:$4 sm:$0xff]  }
  0xe4   :  { %1956 = vmatprep.subr.bf16.mxu1 %v5428_v50  ;;  %v5512_v48 = vld [vmem:[#allocation5 + $0x6ac] ss:$16 sps:$4 sm:$0xff]   ;;  %v5507_v50 = vld [vmem:[#allocation5 + $0x4a8] ss:$16 sps:$4 sm:$0xff]  }
  0xe6   :  { %1916 = vmatpush1.bf16.msra.mxu0 %v5423_v62  ;;  %v5510_v62 = vld [vmem:[#allocation5 + $0x6a8] ss:$16 sps:$4 sm:$0xff]  }
  0xe7   :  { %1957 = vmatpush1.bf16.msra.mxu1 %v5426_v3  ;;  %1917 = vmatprep.subr.bf16.mxu0 %v5431_v51  ;;  %v5515_v3 = vld [vmem:[#allocation5 + $0x48c] ss:$16 sps:$4 sm:$0xff]  }
  0xe8   :  { %1958 = vmatprep.subr.bf16.mxu1 %v5434_v52  ;;  %v5518_v51 = vld [vmem:[#allocation5 + $0x68c] ss:$16 sps:$4 sm:$0xff]  }
  0xe9   :  { %v5521_v52 = vld [vmem:[#allocation5 + $0x46c] ss:$16 sps:$4 sm:$0xff]  }
  0xea   :  { %1918 = vmatpush1.bf16.msra.mxu0 %v5429_v54  ;;  %v5524_v54 = vld [vmem:[#allocation5 + $0x66c] ss:$16 sps:$4 sm:$0xff]  }
  0xeb   :  { %1959 = vmatpush1.bf16.msra.mxu1 %v5432_v55  ;;  %1919 = vmatprep.subr.bf16.mxu0 %v5437_v56  ;;  %v5519_v55 = vld [vmem:[#allocation5 + $0x468] ss:$16 sps:$4 sm:$0xff]  }
  0xec   :  { %1960 = vmatprep.subr.bf16.mxu1 %v5440_v58  ;;  %v5522_v56 = vld [vmem:[#allocation5 + $0x668] ss:$16 sps:$4 sm:$0xff]   ;;  %v5527_v58 = vld [vmem:[#allocation5 + $0x44c] ss:$16 sps:$4 sm:$0xff]  }
  0xee   :  { %1920 = vmatpush1.bf16.msra.mxu0 %v5435_v49  ;;  %v5528_v49 = vld [vmem:[#allocation5 + $0x648] ss:$16 sps:$4 sm:$0xff]  }
  0xef   :  { %1961 = vmatpush1.bf16.msra.mxu1 %v5438_v59  ;;  %1921 = vmatprep.subr.bf16.mxu0 %v5443_v60  ;;  %v5533_v59 = vld [vmem:[#allocation5 + $0x42c] ss:$16 sps:$4 sm:$0xff]  }
  0xf0   :  { %1962 = vmatprep.subr.bf16.mxu1 %v5446_v61  ;;  %v5536_v60 = vld [vmem:[#allocation5 + $0x62c] ss:$16 sps:$4 sm:$0xff]   ;;  %v5531_v61 = vld [vmem:[#allocation5 + $0x428] ss:$16 sps:$4 sm:$0xff]  }
  0xf2   :  { %1922 = vmatpush1.bf16.msra.mxu0 %v5441_v63  ;;  %v5534_v63 = vld [vmem:[#allocation5 + $0x628] ss:$16 sps:$4 sm:$0xff]  }
  0xf3   :  { %1963 = vmatpush1.bf16.msra.mxu1 %v5444_v0  ;;  %1923 = vmatprep.subr.bf16.mxu0 %v5449_v1  ;;  %v5539_v0 = vld [vmem:[#allocation5 + $0x40c] ss:$16 sps:$4 sm:$0xff]  }
  0xf4   :  { %1964 = vmatprep.subr.bf16.mxu1 %v5452_v2  ;;  %v5542_v1 = vld [vmem:[#allocation5 + $0x60c] ss:$16 sps:$4 sm:$0xff]   ;;  %v5537_v2 = vld [vmem:[#allocation5 + $0x408] ss:$16 sps:$4 sm:$0xff]  }
  0xf6   :  { %1924 = vmatpush2.bf16.msra.mxu0 %v5447_v4  ;;  %v5540_v4 = vld [vmem:[#allocation5 + $0x608] ss:$16 sps:$4 sm:$0xff]  }
  0xf7   :  { %1965 = vmatpush2.bf16.msra.mxu1 %v5450_v5  ;;  %1925 = vmatprep.subr.bf16.mxu0 %v5455_v6  ;;  %v5545_v5 = vld [vmem:[#allocation5 + $0x5ec] ss:$16 sps:$4 sm:$0xff]  }
  0xf8   :  { %1966 = vmatprep.subr.bf16.mxu1 %v5458_v7  ;;  %v5548_v6 = vld [vmem:[#allocation5 + $0x7ec] ss:$16 sps:$4 sm:$0xff]   ;;  %v5543_v7 = vld [vmem:[#allocation5 + $0x5e8] ss:$16 sps:$4 sm:$0xff]  }
  0xfa   :  { %1926 = vmatpush2.bf16.msra.mxu0 %v5453_v8  ;;  %v5546_v8 = vld [vmem:[#allocation5 + $0x7e8] ss:$16 sps:$4 sm:$0xff]  }
  0xfb   :  { %1967 = vmatpush2.bf16.msra.mxu1 %v5456_v9  ;;  %1927 = vmatprep.subr.bf16.mxu0 %v5461_v10  ;;  %v5551_v9 = vld [vmem:[#allocation5 + $0x5cc] ss:$16 sps:$4 sm:$0xff]  }
  0xfc   :  { %1968 = vmatprep.subr.bf16.mxu1 %v5464_v11  ;;  %v5554_v10 = vld [vmem:[#allocation5 + $0x7cc] ss:$16 sps:$4 sm:$0xff]   ;;  %v5549_v11 = vld [vmem:[#allocation5 + $0x5c8] ss:$16 sps:$4 sm:$0xff]  }
  0xfe   :  { %1928 = vmatpush2.bf16.msra.mxu0 %v5459_v12  ;;  %v5552_v12 = vld [vmem:[#allocation5 + $0x7c8] ss:$16 sps:$4 sm:$0xff]  }
  0xff   :  { %1969 = vmatpush2.bf16.msra.mxu1 %v5462_v13  ;;  %1929 = vmatprep.subr.bf16.mxu0 %v5467_v14  ;;  %v5557_v13 = vld [vmem:[#allocation5 + $0x5ac] ss:$16 sps:$4 sm:$0xff]  }
 0x100   :  { %1970 = vmatprep.subr.bf16.mxu1 %v5470_v15  ;;  %v5560_v14 = vld [vmem:[#allocation5 + $0x7ac] ss:$16 sps:$4 sm:$0xff]   ;;  %v5555_v15 = vld [vmem:[#allocation5 + $0x5a8] ss:$16 sps:$4 sm:$0xff]  }
 0x102   :  { %1930 = vmatpush2.bf16.msra.mxu0 %v5465_v18  ;;  %v5558_v18 = vld [vmem:[#allocation5 + $0x7a8] ss:$16 sps:$4 sm:$0xff]  }
 0x103   :  { %1971 = vmatpush2.bf16.msra.mxu1 %v5468_v19  ;;  %1931 = vmatprep.subr.bf16.mxu0 %v5473_v20  ;;  %v5563_v19 = vld [vmem:[#allocation5 + $0x58c] ss:$16 sps:$4 sm:$0xff]  }
 0x104   :  { %1972 = vmatprep.subr.bf16.mxu1 %v5476_v21  ;;  %v5566_v20 = vld [vmem:[#allocation5 + $0x78c] ss:$16 sps:$4 sm:$0xff]   ;;  %v5561_v21 = vld [vmem:[#allocation5 + $0x588] ss:$16 sps:$4 sm:$0xff]  }
 0x106   :  { %1932 = vmatpush2.bf16.msra.mxu0 %v5471_v22  ;;  %v5564_v22 = vld [vmem:[#allocation5 + $0x788] ss:$16 sps:$4 sm:$0xff]  }
 0x107   :  { %1973 = vmatpush2.bf16.msra.mxu1 %v5474_v23  ;;  %1933 = vmatprep.subr.bf16.mxu0 %v5479_v24  ;;  %v5569_v23 = vld [vmem:[#allocation5 + $0x56c] ss:$16 sps:$4 sm:$0xff]  }
 0x108   :  { %1974 = vmatprep.subr.bf16.mxu1 %v5482_v25  ;;  %v5572_v24 = vld [vmem:[#allocation5 + $0x76c] ss:$16 sps:$4 sm:$0xff]   ;;  %v5567_v25 = vld [vmem:[#allocation5 + $0x568] ss:$16 sps:$4 sm:$0xff]  }
 0x10a   :  { %1934 = vmatpush2.bf16.msra.mxu0 %v5477_v26  ;;  %v5570_v26 = vld [vmem:[#allocation5 + $0x768] ss:$16 sps:$4 sm:$0xff]  }
 0x10b   :  { %1975 = vmatpush2.bf16.msra.mxu1 %v5480_v27  ;;  %1935 = vmatprep.subr.bf16.mxu0 %v5485_v28  ;;  %v5575_v27 = vld [vmem:[#allocation5 + $0x54c] ss:$16 sps:$4 sm:$0xff]  }
 0x10c   :  { %1976 = vmatprep.subr.bf16.mxu1 %v5488_v29  ;;  %v5578_v28 = vld [vmem:[#allocation5 + $0x74c] ss:$16 sps:$4 sm:$0xff]   ;;  %v5573_v29 = vld [vmem:[#allocation5 + $0x548] ss:$16 sps:$4 sm:$0xff]  }
 0x10e   :  { %1936 = vmatpush2.bf16.msra.mxu0 %v5483_v30  ;;  %v5576_v30 = vld [vmem:[#allocation5 + $0x748] ss:$16 sps:$4 sm:$0xff]  }
 0x10f   :  { %1977 = vmatpush2.bf16.msra.mxu1 %v5486_v33  ;;  %1937 = vmatprep.subr.bf16.mxu0 %v5491_v34  ;;  %v5581_v33 = vld [vmem:[#allocation5 + $0x52c] ss:$16 sps:$4 sm:$0xff]  }
 0x110   :  { %1978 = vmatprep.subr.bf16.mxu1 %v5494_v35  ;;  %v5584_v34 = vld [vmem:[#allocation5 + $0x72c] ss:$16 sps:$4 sm:$0xff]   ;;  %v5579_v35 = vld [vmem:[#allocation5 + $0x528] ss:$16 sps:$4 sm:$0xff]  }
 0x112   :  { %1938 = vmatpush2.bf16.msra.mxu0 %v5489_v36  ;;  %v5582_v36 = vld [vmem:[#allocation5 + $0x728] ss:$16 sps:$4 sm:$0xff]  }
 0x113   :  { %1979 = vmatpush2.bf16.msra.mxu1 %v5492_v37  ;;  %1989 = vmatprep.subr.bf16.mxu0 %v5497_v38  ;;  %v5587_v37 = vld [vmem:[#allocation5 + $0x50c] ss:$16 sps:$4 sm:$0xff]  }
 0x114   :  { %2030 = vmatprep.subr.bf16.mxu1 %v5500_v39  ;;  %v5590_v38 = vld [vmem:[#allocation5 + $0x70c] ss:$16 sps:$4 sm:$0xff]   ;;  %v5585_v39 = vld [vmem:[#allocation5 + $0x508] ss:$16 sps:$4 sm:$0xff]  }
 0x115   :  { %1940 = vmatmul.mubr.bf16.vlgmr.msra.gmra.mxu0 %v6312_v16  ;;  %v5513_v16 = vld [vmem:[#allocation5 + $0x488] ss:$16 sps:$4 sm:$0xff]  }
 0x116   :  { %1981 = vmatmul.mubr.bf16.vlgmr.msra.gmra.mxu1 %v6314_v17  ;;  %1990 = vmatpush1.bf16.msra.mxu0 %v5495_v40  ;;  %v5516_v17 = vld [vmem:[#allocation5 + $0x688] ss:$16 sps:$4 sm:$0xff]  }
 0x117   :  { %2031 = vmatpush1.bf16.msra.mxu1 %v5498_v41  ;;  %1991 = vmatprep.subr.bf16.mxu0 %v5503_v42  ;;  %v5588_v40 = vld [vmem:[#allocation5 + $0x708] ss:$16 sps:$4 sm:$0xff]   ;;  %v6350_v41 = vld [vmem:[#allocation7] sm:$0xf]  ;;  %v6353_v42 = vsub.s32 0, %v6299_v43 }
 0x118   :  { %2032 = vmatprep.subr.bf16.mxu1 %v5506_v44  ;;  %2021 = vmatprep.mubr.bf16.mxu0 %v6326_v53  ;;  %v5530_v53 = vld [vmem:[#allocation5 + $0x64c] ss:$16 sps:$4 sm:$0xff]   ;;  %v6356_v44 = vsub.s32 1, %v6299_v43 }
 0x119   :  { %2062 = vmatprep.mubr.bf16.mxu1 %v6330_v57  ;;  %v5525_v57 = vld [vmem:[#allocation5 + $0x448] ss:$16 sps:$4 sm:$0xff]  }
 0x11a   :  { %1992 = vmatpush1.bf16.msra.mxu0 %v5501_v45  ;;  %v446_v45 = vrot.slane %v6350_v41, %v6353_v42 }
 0x11b   :  { %2033 = vmatpush1.bf16.msra.mxu1 %v5504_v46  ;;  %1993 = vmatprep.subr.bf16.mxu0 %v5509_v47  ;;  %v450_v46 = vrot.slane %v6350_v41, %v6356_v44 }
 0x11c   :  { %2034 = vmatprep.subr.bf16.mxu1 %v5512_v48 }
 0x11e   :  { %1994 = vmatpush1.bf16.msra.mxu0 %v5507_v50 }
 0x11f   :  { %2035 = vmatpush1.bf16.msra.mxu1 %v5510_v62  ;;  %1995 = vmatprep.subr.bf16.mxu0 %v5515_v3 }
 0x120   :  { %2036 = vmatprep.subr.bf16.mxu1 %v5518_v51 }
 0x122   :  { %1996 = vmatpush1.bf16.msra.mxu0 %v5513_v16 }
 0x123   :  { %2037 = vmatpush1.bf16.msra.mxu1 %v5516_v17  ;;  %1997 = vmatprep.subr.bf16.mxu0 %v5521_v52 }
 0x124   :  { %2038 = vmatprep.subr.bf16.mxu1 %v5524_v54 }
 0x126   :  { %1998 = vmatpush1.bf16.msra.mxu0 %v5519_v55 }
 0x127   :  { %2039 = vmatpush1.bf16.msra.mxu1 %v5522_v56  ;;  %1999 = vmatprep.subr.bf16.mxu0 %v5527_v58 }
 0x128   :  { %2040 = vmatprep.subr.bf16.mxu1 %v5530_v53 }
 0x12a   :  { %2000 = vmatpush1.bf16.msra.mxu0 %v5525_v57 }
 0x12b   :  { %2041 = vmatpush1.bf16.msra.mxu1 %v5528_v49  ;;  %2001 = vmatprep.subr.bf16.mxu0 %v5533_v59 }
 0x12c   :  { %2042 = vmatprep.subr.bf16.mxu1 %v5536_v60 }
 0x12e   :  { %2002 = vmatpush1.bf16.msra.mxu0 %v5531_v61 }
 0x12f   :  { %2043 = vmatpush1.bf16.msra.mxu1 %v5534_v63  ;;  %2003 = vmatprep.subr.bf16.mxu0 %v5539_v0 }
 0x130   :  { %2044 = vmatprep.subr.bf16.mxu1 %v5542_v1 }
 0x132   :  { %2004 = vmatpush1.bf16.msra.mxu0 %v5537_v2  ;;  %v5591_v2 = vld [vmem:[#allocation8 + $0xe0] ss:$16 sps:$4 sm:$0xff]  }
 0x133   :  { %2045 = vmatpush1.bf16.msra.mxu1 %v5540_v4  ;;  %2005 = vmatprep.subr.bf16.mxu0 %v5545_v5  ;;  %v5593_v4 = vld [vmem:[#allocation8 + $0xe4] ss:$16 sps:$4 sm:$0xff]   ;;  %v5594_v5 = vld [vmem:[#allocation8 + $0x2e0] ss:$16 sps:$4 sm:$0xff]  }
 0x134   :  { %2046 = vmatprep.subr.bf16.mxu1 %v5548_v6  ;;  %v5596_v6 = vld [vmem:[#allocation8 + $0x2e4] ss:$16 sps:$4 sm:$0xff]  }
 0x136   :  { %2006 = vmatpush2.bf16.msra.mxu0 %v5543_v7  ;;  %v5599_v7 = vld [vmem:[#allocation8 + $0xc4] ss:$16 sps:$4 sm:$0xff]  }
 0x137   :  { %2047 = vmatpush2.bf16.msra.mxu1 %v5546_v8  ;;  %2007 = vmatprep.subr.bf16.mxu0 %v5551_v9  ;;  %v5602_v8 = vld [vmem:[#allocation8 + $0x2c4] ss:$16 sps:$4 sm:$0xff]   ;;  %v5597_v9 = vld [vmem:[#allocation8 + $0xc0] ss:$16 sps:$4 sm:$0xff]  }
 0x138   :  { %2048 = vmatprep.subr.bf16.mxu1 %v5554_v10  ;;  %v5600_v10 = vld [vmem:[#allocation8 + $0x2c0] ss:$16 sps:$4 sm:$0xff]  }
 0x13a   :  { %2008 = vmatpush2.bf16.msra.mxu0 %v5549_v11  ;;  %v5605_v11 = vld [vmem:[#allocation8 + $0xa4] ss:$16 sps:$4 sm:$0xff]  }
 0x13b   :  { %2049 = vmatpush2.bf16.msra.mxu1 %v5552_v12  ;;  %2009 = vmatprep.subr.bf16.mxu0 %v5557_v13  ;;  %v5608_v12 = vld [vmem:[#allocation8 + $0x2a4] ss:$16 sps:$4 sm:$0xff]   ;;  %v5603_v13 = vld [vmem:[#allocation8 + $0xa0] ss:$16 sps:$4 sm:$0xff]  }
 0x13c   :  { %2050 = vmatprep.subr.bf16.mxu1 %v5560_v14  ;;  %v5606_v14 = vld [vmem:[#allocation8 + $0x2a0] ss:$16 sps:$4 sm:$0xff]  }
 0x13e   :  { %2010 = vmatpush2.bf16.msra.mxu0 %v5555_v15  ;;  %v5611_v15 = vld [vmem:[#allocation8 + $0x84] ss:$16 sps:$4 sm:$0xff]  }
 0x13f   :  { %2051 = vmatpush2.bf16.msra.mxu1 %v5558_v18  ;;  %2011 = vmatprep.subr.bf16.mxu0 %v5563_v19  ;;  %v5614_v18 = vld [vmem:[#allocation8 + $0x284] ss:$16 sps:$4 sm:$0xff]   ;;  %v5609_v19 = vld [vmem:[#allocation8 + $0x80] ss:$16 sps:$4 sm:$0xff]  }
 0x140   :  { %2052 = vmatprep.subr.bf16.mxu1 %v5566_v20  ;;  %v5612_v20 = vld [vmem:[#allocation8 + $0x280] ss:$16 sps:$4 sm:$0xff]  }
 0x142   :  { %2012 = vmatpush2.bf16.msra.mxu0 %v5561_v21  ;;  %v5617_v21 = vld [vmem:[#allocation8 + $0x64] ss:$16 sps:$4 sm:$0xff]  }
 0x143   :  { %2053 = vmatpush2.bf16.msra.mxu1 %v5564_v22  ;;  %2013 = vmatprep.subr.bf16.mxu0 %v5569_v23  ;;  %v5620_v22 = vld [vmem:[#allocation8 + $0x264] ss:$16 sps:$4 sm:$0xff]   ;;  %v5615_v23 = vld [vmem:[#allocation8 + $0x60] ss:$16 sps:$4 sm:$0xff]  }
 0x144   :  { %2054 = vmatprep.subr.bf16.mxu1 %v5572_v24  ;;  %v5618_v24 = vld [vmem:[#allocation8 + $0x260] ss:$16 sps:$4 sm:$0xff]  }
 0x146   :  { %2014 = vmatpush2.bf16.msra.mxu0 %v5567_v25  ;;  %v5623_v25 = vld [vmem:[#allocation8 + $0x44] ss:$16 sps:$4 sm:$0xff]  }
 0x147   :  { %2055 = vmatpush2.bf16.msra.mxu1 %v5570_v26  ;;  %2015 = vmatprep.subr.bf16.mxu0 %v5575_v27  ;;  %v5626_v26 = vld [vmem:[#allocation8 + $0x244] ss:$16 sps:$4 sm:$0xff]   ;;  %v5621_v27 = vld [vmem:[#allocation8 + $0x40] ss:$16 sps:$4 sm:$0xff]  }
 0x148   :  { %2056 = vmatprep.subr.bf16.mxu1 %v5578_v28  ;;  %v5624_v28 = vld [vmem:[#allocation8 + $0x240] ss:$16 sps:$4 sm:$0xff]  }
 0x14a   :  { %2016 = vmatpush2.bf16.msra.mxu0 %v5573_v29  ;;  %v5629_v29 = vld [vmem:[#allocation8 + $0x24] ss:$16 sps:$4 sm:$0xff]  }
 0x14b   :  { %2057 = vmatpush2.bf16.msra.mxu1 %v5576_v30  ;;  %2017 = vmatprep.subr.bf16.mxu0 %v5581_v33  ;;  %v5632_v30 = vld [vmem:[#allocation8 + $0x224] ss:$16 sps:$4 sm:$0xff]   ;;  %v5627_v33 = vld [vmem:[#allocation8 + $0x20] ss:$16 sps:$4 sm:$0xff]  }
 0x14c   :  { %2058 = vmatprep.subr.bf16.mxu1 %v5584_v34  ;;  %v5630_v34 = vld [vmem:[#allocation8 + $0x220] ss:$16 sps:$4 sm:$0xff]  }
 0x14e   :  { %2018 = vmatpush2.bf16.msra.mxu0 %v5579_v35  ;;  %v5635_v35 = vld [vmem:[#allocation8 + $0x4] ss:$16 sps:$4 sm:$0xff]  }
 0x14f   :  { %2059 = vmatpush2.bf16.msra.mxu1 %v5582_v36  ;;  %2019 = vmatprep.subr.bf16.mxu0 %v5587_v37  ;;  %v5638_v36 = vld [vmem:[#allocation8 + $0x204] ss:$16 sps:$4 sm:$0xff]   ;;  %v5633_v37 = vld [vmem:[#allocation8] ss:$16 sps:$4 sm:$0xff]  }
 0x150   :  { %2060 = vmatprep.subr.bf16.mxu1 %v5590_v38  ;;  %v5636_v38 = vld [vmem:[#allocation8 + $0x200] ss:$16 sps:$4 sm:$0xff]  }
 0x152   :  { %2020 = vmatpush2.bf16.msra.mxu0 %v5585_v39  ;;  %v5641_v39 = vld [vmem:[#allocation8 + $0x1e4] ss:$16 sps:$4 sm:$0xff]  }
 0x153   :  { %2061 = vmatpush2.bf16.msra.mxu1 %v5588_v40  ;;  %2916 = vmatprep.subr.bf16.mxu0 %v5593_v4  ;;  %v5644_v40 = vld [vmem:[#allocation8 + $0x3e4] ss:$16 sps:$4 sm:$0xff]  }
 0x154   :  { %2957 = vmatprep.subr.bf16.mxu1 %v5596_v6 }
 0x155   :  { %v1777_v47 = vpop.f32.mrf.mxu0  ;;  %2022 = vmatmul.mubr.bf16.vlgmr.msra.gmra.mxu0 %v6336_v31 }
 0x156   :  { %v1818_v48 = vpop.f32.mrf.mxu1  ;;  %2063 = vmatmul.mubr.bf16.vlgmr.msra.gmra.mxu1 %v6340_v32  ;;  %v1778_v50 = vadd.f32 %v1777_v47, %v446_v45  ;;  %2917 = vmatpush1.bf16.msra.mxu0 %v5591_v2  ;;  %v5639_v45 = vld [vmem:[#allocation8 + $0x1e0] ss:$16 sps:$4 sm:$0xff]  }
 0x157   :  { %v1779_v62 = vpop.f32.mrf.mxu0  ;;  %2958 = vmatpush1.bf16.msra.mxu1 %v5594_v5  ;;  %2918 = vmatprep.subr.bf16.mxu0 %v5599_v7 }
 0x158   :  { %v1820_v3 = vpop.f32.mrf.mxu1  ;;  %v1819_v51 = vadd.f32 %v1818_v48, %v1778_v50  ;;  %v1780_v16 = vadd.f32 %v1779_v62, %v450_v46  ;;  %2959 = vmatprep.subr.bf16.mxu1 %v5602_v8  ;;  %v5642_v46 = vld [vmem:[#allocation8 + $0x3e0] ss:$16 sps:$4 sm:$0xff]  }
 0x159   :  { %v1781_v17 = vpop.f32.mrf.mxu0 }
 0x15a   :  { %v1822_v52 = vpop.f32.mrf.mxu1  ;;  %v1821_v54 = vadd.f32 %v1820_v3, %v1780_v16  ;;  %2919 = vmatpush1.bf16.msra.mxu0 %v5597_v9 }
 0x15b   :  { %v1782_v55 = vpop.f32.mrf.mxu0  ;;  %2960 = vmatpush1.bf16.msra.mxu1 %v5600_v10  ;;  %2920 = vmatprep.subr.bf16.mxu0 %v5605_v11  ;;  %v6369_v52 = vsub.s32 2, %v6299_v43 }
 0x15c   :  { %v1823_v56 = vpop.f32.mrf.mxu1  ;;  %2961 = vmatprep.subr.bf16.mxu1 %v5608_v12 }
 0x15d   :  { %v454_v55 = vrot.slane %v6350_v41, %v6369_v52 }
 0x15e   :  { %2921 = vmatpush1.bf16.msra.mxu0 %v5603_v13 }
 0x15f   :  { %2962 = vmatpush1.bf16.msra.mxu1 %v5606_v14  ;;  %2922 = vmatprep.subr.bf16.mxu0 %v5611_v15 }
 0x160   :  { %2963 = vmatprep.subr.bf16.mxu1 %v5614_v18 }
 0x162   :  { %2923 = vmatpush1.bf16.msra.mxu0 %v5609_v19 }
 0x163   :  { %2964 = vmatpush1.bf16.msra.mxu1 %v5612_v20  ;;  %2924 = vmatprep.subr.bf16.mxu0 %v5617_v21 }
 0x164   :  { %2965 = vmatprep.subr.bf16.mxu1 %v5620_v22 }
 0x166   :  { %2925 = vmatpush1.bf16.msra.mxu0 %v5615_v23 }
 0x167   :  { %2966 = vmatpush1.bf16.msra.mxu1 %v5618_v24  ;;  %2926 = vmatprep.subr.bf16.mxu0 %v5623_v25 }
 0x168   :  { %2967 = vmatprep.subr.bf16.mxu1 %v5626_v26 }
 0x16a   :  { %2927 = vmatpush1.bf16.msra.mxu0 %v5621_v27 }
 0x16b   :  { %2968 = vmatpush1.bf16.msra.mxu1 %v5624_v28  ;;  %2928 = vmatprep.subr.bf16.mxu0 %v5629_v29 }
 0x16c   :  { %2969 = vmatprep.subr.bf16.mxu1 %v5632_v30 }
 0x16e   :  { %2929 = vmatpush1.bf16.msra.mxu0 %v5627_v33 }
 0x16f   :  { %2970 = vmatpush1.bf16.msra.mxu1 %v5630_v34  ;;  %2930 = vmatprep.subr.bf16.mxu0 %v5635_v35  ;;  %v5645_v35 = vld [vmem:[#allocation8 + $0x1c0] ss:$16 sps:$4 sm:$0xff]  }
 0x170   :  { %2971 = vmatprep.subr.bf16.mxu1 %v5638_v36  ;;  %v5647_v36 = vld [vmem:[#allocation8 + $0x1c4] ss:$16 sps:$4 sm:$0xff]  }
 0x172   :  { %2931 = vmatpush1.bf16.msra.mxu0 %v5633_v37  ;;  %v5648_v37 = vld [vmem:[#allocation8 + $0x3c0] ss:$16 sps:$4 sm:$0xff]  }
 0x173   :  { %2972 = vmatpush1.bf16.msra.mxu1 %v5636_v38  ;;  %2932 = vmatprep.subr.bf16.mxu0 %v5641_v39  ;;  %v5650_v38 = vld [vmem:[#allocation8 + $0x3c4] ss:$16 sps:$4 sm:$0xff]  }
 0x174   :  { %2973 = vmatprep.subr.bf16.mxu1 %v5644_v40  ;;  %v5653_v39 = vld [vmem:[#allocation8 + $0x1a4] ss:$16 sps:$4 sm:$0xff]  }
 0x175   :  { %v5656_v40 = vld [vmem:[#allocation8 + $0x3a4] ss:$16 sps:$4 sm:$0xff]  }
 0x176   :  { %2933 = vmatpush2.bf16.msra.mxu0 %v5639_v45  ;;  %v5651_v45 = vld [vmem:[#allocation8 + $0x1a0] ss:$16 sps:$4 sm:$0xff]  }
 0x177   :  { %2974 = vmatpush2.bf16.msra.mxu1 %v5642_v46  ;;  %2934 = vmatprep.subr.bf16.mxu0 %v5647_v36  ;;  %v5654_v46 = vld [vmem:[#allocation8 + $0x3a0] ss:$16 sps:$4 sm:$0xff]   ;;  %v5707_v36 = vld [vmem:[#allocation8 + $0x8c] ss:$16 sps:$4 sm:$0xff]  }
 0x178   :  { %2975 = vmatprep.subr.bf16.mxu1 %v5650_v38  ;;  %v5705_v38 = vld [vmem:[#allocation8 + $0x88] ss:$16 sps:$4 sm:$0xff]  }
 0x17a   :  { %2935 = vmatpush2.bf16.msra.mxu0 %v5645_v35  ;;  %v5702_v35 = vld [vmem:[#allocation8 + $0x2a8] ss:$16 sps:$4 sm:$0xff]  }
 0x17b   :  { %2976 = vmatpush2.bf16.msra.mxu1 %v5648_v37  ;;  %2936 = vmatprep.subr.bf16.mxu0 %v5653_v39  ;;  %v5710_v37 = vld [vmem:[#allocation8 + $0x28c] ss:$16 sps:$4 sm:$0xff]   ;;  %v5708_v39 = vld [vmem:[#allocation8 + $0x288] ss:$16 sps:$4 sm:$0xff]  }
 0x17c   :  { %2977 = vmatprep.subr.bf16.mxu1 %v5656_v40  ;;  %v5713_v40 = vld [vmem:[#allocation8 + $0x6c] ss:$16 sps:$4 sm:$0xff]  }
 0x17e   :  { %2937 = vmatpush2.bf16.msra.mxu0 %v5651_v45  ;;  %v5716_v45 = vld [vmem:[#allocation8 + $0x26c] ss:$16 sps:$4 sm:$0xff]  }
 0x17f   :  { %2978 = vmatpush2.bf16.msra.mxu1 %v5654_v46  ;;  %v5711_v46 = vld [vmem:[#allocation8 + $0x68] ss:$16 sps:$4 sm:$0xff]  }
 0x195   :  { %v1859_v58 = vpop.f32.mrf.mxu0 }
 0x196   :  { %v1900_v53 = vpop.f32.mrf.mxu1  ;;  %v1860_v57 = vadd.f32 %v1859_v58, %v1819_v51 }
 0x197   :  { %v1861_v49 = vpop.f32.mrf.mxu0 }
 0x198   :  { %v1902_v59 = vpop.f32.mrf.mxu1  ;;  %v6364_v60 = vadd.f32 %v1900_v53, %v1860_v57  ;;  %v1862_v31 = vadd.f32 %v1861_v49, %v1821_v54  ;;  %v6372_v54 = vsub.s32 3, %v6299_v43 }
 0x199   :  { %v1863_v61 = vpop.f32.mrf.mxu0 }
 0x19a   :  { %v1904_v32 = vpop.f32.mrf.mxu1  ;;  %v6366_v63 = vadd.f32 %v1902_v59, %v1862_v31  ;;  %v458_v56 = vrot.slane %v6350_v41, %v6372_v54  ;;  %v2075_v57 = vmul.f32 0.01, %v6364_v60  ;;  %vm2071_vm1 = vcmp.gt.f32.partialorder %v6364_v60, 0.0 }
 0x19b   :  { %v1864_v0 = vpop.f32.mrf.mxu0 }
 0x19c   :  { %v1905_v1 = vpop.f32.mrf.mxu1  ;;  %v2076_v58 = vmul.f32 0.01, %v6366_v63  ;;  %vm2072_vm0 = vcmp.gt.f32.partialorder %v6366_v63, 0.0  ;;  %v6386_v32 = vsel %vm2071_vm1, %v6364_v60, %v2075_v57  ;;  %v5677_v57 = vld [vmem:[#allocation8 + $0x124] ss:$16 sps:$4 sm:$0xff]  }
 0x19d   :  { %v2084_v13 = vsel %vm2083_vm2, %v6386_v32, 0.0 }
 0x19e   :  { %v6383_v59 = vsel %vm2072_vm0, %v6366_v63, %v2076_v58  ;;  %v2095_v63 = vmul.f32 %v6386_v32, %v6386_v32  ;;  %v5669_v58 = vld [vmem:[#allocation8 + $0x140] ss:$16 sps:$4 sm:$0xff]  }
 0x19f   :  { %v2096_v1 = vmul.f32 %v6383_v59, %v6383_v59  ;;  %v2085_v9 = vsel %vm2083_vm2, %v6383_v59, 0.0 }
 0x1a0   :  { %v2086_v19 = vadd.f32 %v2085_v9, %v2084_v13  ;;  %v2099_v22 = vsel %vm2083_vm2, %v2095_v63, 0.0 }
 0x1a1   :  { %v2100_v14 = vsel %vm2083_vm2, %v2096_v1, 0.0  ;;  %v5684_v1 = vld [vmem:[#allocation8 + $0x300] ss:$16 sps:$4 sm:$0xff]  }
 0x1a2   :  { %v2101_v25 = vadd.f32 %v2100_v14, %v2099_v22 }
 0x1d5   :  { %v1941_v47 = vpop.f32.mrf.mxu0 }
 0x1d6   :  { %v1982_v48 = vpop.f32.mrf.mxu1  ;;  %v1942_v53 = vadd.f32 %v1941_v47, %v454_v55  ;;  %v5659_v47 = vld [vmem:[#allocation8 + $0x184] ss:$16 sps:$4 sm:$0xff]  }
 0x1d7   :  { %v1943_v50 = vpop.f32.mrf.mxu0  ;;  %2938 = vmatprep.subr.bf16.mxu0 %v5659_v47  ;;  %v5671_v55 = vld [vmem:[#allocation8 + $0x144] ss:$16 sps:$4 sm:$0xff]   ;;  %v5714_v47 = vld [vmem:[#allocation8 + $0x268] ss:$16 sps:$4 sm:$0xff]  }
 0x1d8   :  { %v1984_v62 = vpop.f32.mrf.mxu1  ;;  %v1944_v49 = vadd.f32 %v1943_v50, %v458_v56  ;;  %v1983_v43 = vadd.f32 %v1982_v48, %v1942_v53  ;;  %v5662_v48 = vld [vmem:[#allocation8 + $0x384] ss:$16 sps:$4 sm:$0xff]   ;;  %v5657_v50 = vld [vmem:[#allocation8 + $0x180] ss:$16 sps:$4 sm:$0xff]  }
 0x1d9   :  { %v1945_v3 = vpop.f32.mrf.mxu0  ;;  %2979 = vmatprep.subr.bf16.mxu1 %v5662_v48  ;;  %2939 = vmatpush2.bf16.msra.mxu0 %v5657_v50  ;;  %v5674_v56 = vld [vmem:[#allocation8 + $0x344] ss:$16 sps:$4 sm:$0xff]   ;;  %v5672_v53 = vld [vmem:[#allocation8 + $0x340] ss:$16 sps:$4 sm:$0xff]   ;;  %v5719_v48 = vld [vmem:[#allocation8 + $0x4c] ss:$16 sps:$4 sm:$0xff]  }
 0x1da   :  { %v1986_v51 = vpop.f32.mrf.mxu1  ;;  %v1985_v41 = vadd.f32 %v1984_v62, %v1944_v49  ;;  %v5660_v62 = vld [vmem:[#allocation8 + $0x380] ss:$16 sps:$4 sm:$0xff]   ;;  %v5680_v49 = vld [vmem:[#allocation8 + $0x324] ss:$16 sps:$4 sm:$0xff]   ;;  %v5722_v50 = vld [vmem:[#allocation8 + $0x24c] ss:$16 sps:$4 sm:$0xff]  }
 0x1db   :  { %v1946_v16 = vpop.f32.mrf.mxu0  ;;  %2980 = vmatpush2.bf16.msra.mxu1 %v5660_v62  ;;  %v5663_v3 = vld [vmem:[#allocation8 + $0x160] ss:$16 sps:$4 sm:$0xff]   ;;  %v5665_v51 = vld [vmem:[#allocation8 + $0x164] ss:$16 sps:$4 sm:$0xff]   ;;  %v5717_v62 = vld [vmem:[#allocation8 + $0x48] ss:$16 sps:$4 sm:$0xff]  }
 0x1dc   :  { %v1987_v17 = vpop.f32.mrf.mxu1  ;;  %v5666_v16 = vld [vmem:[#allocation8 + $0x360] ss:$16 sps:$4 sm:$0xff]   ;;  %2940 = vmatprep.subr.bf16.mxu0 %v5665_v51  ;;  %v5725_v51 = vld [vmem:[#allocation8 + $0x2c] ss:$16 sps:$4 sm:$0xff]  }
 0x1dd   :  { %v5668_v17 = vld [vmem:[#allocation8 + $0x364] ss:$16 sps:$4 sm:$0xff]   ;;  %2941 = vmatpush2.bf16.msra.mxu0 %v5663_v3  ;;  %v5720_v3 = vld [vmem:[#allocation8 + $0x248] ss:$16 sps:$4 sm:$0xff]  }
 0x1de   :  { %2981 = vmatprep.subr.bf16.mxu1 %v5668_v17  ;;  %2942 = vmatprep.subr.bf16.mxu0 %v5671_v55  ;;  %v5723_v17 = vld [vmem:[#allocation8 + $0x28] ss:$16 sps:$4 sm:$0xff]  }
 0x1df   :  { %2982 = vmatpush2.bf16.msra.mxu1 %v5666_v16  ;;  %v5728_v16 = vld [vmem:[#allocation8 + $0x22c] ss:$16 sps:$4 sm:$0xff]   ;;  %v5726_v55 = vld [vmem:[#allocation8 + $0x228] ss:$16 sps:$4 sm:$0xff]  }
 0x1e0   :  { %2983 = vmatprep.subr.bf16.mxu1 %v5674_v56  ;;  %v5731_v56 = vld [vmem:[#allocation8 + $0xc] ss:$16 sps:$4 sm:$0xff]  }
 0x1e1   :  { %2943 = vmatpush2.bf16.msra.mxu0 %v5669_v58  ;;  %v5734_v58 = vld [vmem:[#allocation8 + $0x20c] ss:$16 sps:$4 sm:$0xff]  }
 0x1e2   :  { %2944 = vmatprep.subr.bf16.mxu0 %v5677_v57  ;;  %v5732_v57 = vld [vmem:[#allocation8 + $0x208] ss:$16 sps:$4 sm:$0xff]  }
 0x1e3   :  { %2984 = vmatpush2.bf16.msra.mxu1 %v5672_v53  ;;  %v5729_v53 = vld [vmem:[#allocation8 + $0x8] ss:$16 sps:$4 sm:$0xff]  }
 0x1e4   :  { %2985 = vmatprep.subr.bf16.mxu1 %v5680_v49  ;;  %v5737_v49 = vld [vmem:[#allocation8 + $0x1ec] ss:$16 sps:$4 sm:$0xff]  }
 0x215   :  { %v2023_v31 = vpop.f32.mrf.mxu0 }
 0x216   :  { %v2064_v61 = vpop.f32.mrf.mxu1  ;;  %v2024_v0 = vadd.f32 %v2023_v31, %v1983_v43  ;;  %v5675_v43 = vld [vmem:[#allocation8 + $0x120] ss:$16 sps:$4 sm:$0xff]  }
 0x217   :  { %v2025_v2 = vpop.f32.mrf.mxu0  ;;  %v5678_v31 = vld [vmem:[#allocation8 + $0x320] ss:$16 sps:$4 sm:$0xff]   ;;  %2945 = vmatpush2.bf16.msra.mxu0 %v5675_v43  ;;  %v5740_v43 = vld [vmem:[#allocation8 + $0x3ec] ss:$16 sps:$4 sm:$0xff]  }
 0x218   :  { %v2066_v4 = vpop.f32.mrf.mxu1  ;;  %v2065_v5 = vadd.f32 %v2064_v61, %v2024_v0  ;;  %v2026_v6 = vadd.f32 %v2025_v2, %v1985_v41  ;;  %v5683_v61 = vld [vmem:[#allocation8 + $0x104] ss:$16 sps:$4 sm:$0xff]   ;;  %v5681_v0 = vld [vmem:[#allocation8 + $0x100] ss:$16 sps:$4 sm:$0xff]   ;;  %2986 = vmatpush2.bf16.msra.mxu1 %v5678_v31  ;;  %v5689_v2 = vld [vmem:[#allocation8 + $0xec] ss:$16 sps:$4 sm:$0xff]  }
 0x219   :  { %v2027_v7 = vpop.f32.mrf.mxu0  ;;  %v5686_v41 = vld [vmem:[#allocation8 + $0x304] ss:$16 sps:$4 sm:$0xff]   ;;  %2946 = vmatprep.subr.bf16.mxu0 %v5683_v61  ;;  %v5735_v31 = vld [vmem:[#allocation8 + $0x1e8] ss:$16 sps:$4 sm:$0xff]  }
 0x21a   :  { %v2068_v8 = vpop.f32.mrf.mxu1  ;;  %vm2073_vm3 = vcmp.gt.f32.partialorder %v2065_v5, 0.0  ;;  %v2077_v60 = vmul.f32 0.01, %v2065_v5  ;;  %v2067_v10 = vadd.f32 %v2066_v4, %v2026_v6  ;;  %2987 = vmatprep.subr.bf16.mxu1 %v5686_v41  ;;  %v5692_v4 = vld [vmem:[#allocation8 + $0x2ec] ss:$16 sps:$4 sm:$0xff]  }
 0x21b   :  { %v2028_v11 = vpop.f32.mrf.mxu0  ;;  %2947 = vmatpush2.bf16.msra.mxu0 %v5681_v0  ;;  %v5738_v61 = vld [vmem:[#allocation8 + $0x3e8] ss:$16 sps:$4 sm:$0xff]   ;;  %v5743_v41 = vld [vmem:[#allocation8 + $0x1cc] ss:$16 sps:$4 sm:$0xff]  }
 0x21c   :  { %v2069_v12 = vpop.f32.mrf.mxu1  ;;  %v6397_v15 = vsel %vm2073_vm3, %v2065_v5, %v2077_v60  ;;  %vm2074_vm4 = vcmp.gt.f32.partialorder %v2067_v10, 0.0  ;;  %v2078_v18 = vmul.f32 0.01, %v2067_v10  ;;  %2988 = vmatpush2.bf16.msra.mxu1 %v5684_v1  ;;  %2998 = vmatprep.subr.bf16.mxu0 %v5689_v2  ;;  %v5746_v0 = vld [vmem:[#allocation8 + $0x3cc] ss:$16 sps:$4 sm:$0xff]  }
 0x21d   :  { %v2087_v20 = vsel %vm2083_vm2, %v6397_v15, 0.0  ;;  %v2097_v21 = vmul.f32 %v6397_v15, %v6397_v15  ;;  %3039 = vmatprep.subr.bf16.mxu1 %v5692_v4  ;;  %v5741_v1 = vld [vmem:[#allocation8 + $0x1c8] ss:$16 sps:$4 sm:$0xff]   ;;  %v5749_v4 = vld [vmem:[#allocation8 + $0x1ac] ss:$16 sps:$4 sm:$0xff]  }
 0x21e   :  { %v6404_v23 = vsel %vm2074_vm4, %v2067_v10, %v2078_v18  ;;  %v2088_v24 = vadd.f32 %v2087_v20, %v2086_v19  ;;  %v5744_v2 = vld [vmem:[#allocation8 + $0x3c8] ss:$16 sps:$4 sm:$0xff]  }
 0x21f   :  { %v2089_v26 = vsel %vm2083_vm2, %v6404_v23, 0.0  ;;  %v2098_v27 = vmul.f32 %v6404_v23, %v6404_v23  ;;  %v2102_v28 = vsel %vm2083_vm2, %v2097_v21, 0.0 }
 0x220   :  { %v2090_v29 = vadd.f32 %v2089_v26, %v2088_v24  ;;  %v2103_v30 = vadd.f32 %v2102_v28, %v2101_v25  ;;  %v5687_v26 = vld [vmem:[#allocation8 + $0xe8] ss:$16 sps:$4 sm:$0xff]  }
 0x221   :  { %v2104_v33 = vsel %vm2083_vm2, %v2098_v27, 0.0  ;;  %v5690_v27 = vld [vmem:[#allocation8 + $0x2e8] ss:$16 sps:$4 sm:$0xff]  }
 0x222   :  { %2091 = vadd.xlane.f32.xlu0 %v2090_v29  ;;  %v2105_v34 = vadd.f32 %v2104_v33, %v2103_v30  ;;  %v5701_v30 = vld [vmem:[#allocation8 + $0xac] ss:$16 sps:$4 sm:$0xff]  }
 0x223   :  { %v5704_v33 = vld [vmem:[#allocation8 + $0x2ac] ss:$16 sps:$4 sm:$0xff]  }
 0x226   :  { %2106 = vadd.xlane.f32.xlu0 %v2105_v34  ;;  %v5699_v34 = vld [vmem:[#allocation8 + $0xa8] ss:$16 sps:$4 sm:$0xff]  }
 0x2ab   :  { %v2092_v5 = vpop.xlane.xlu0 %2091 }
 0x2ac   :  { %v2094_v6 = vmul.f32 0.001953125, %v2092_v5  ;;  %v5752_v5 = vld [vmem:[#allocation8 + $0x3ac] ss:$16 sps:$4 sm:$0xff]  }
 0x2ae   :  { %v2109_v7 = vmul.f32 %v2094_v6, %v2094_v6  ;;  %v2113_v11 = vsub.f32 %v6383_v59, %v2094_v6  ;;  %v2115_v12 = vsub.f32 %v6404_v23, %v2094_v6  ;;  %v2112_v13 = vsub.f32 %v6386_v32, %v2094_v6  ;;  %v5695_v59 = vld [vmem:[#allocation8 + $0xcc] ss:$16 sps:$4 sm:$0xff]   ;;  %v5693_v32 = vld [vmem:[#allocation8 + $0xc8] ss:$16 sps:$4 sm:$0xff]  }
 0x2af   :  { %v2107_v63 = vpop.xlane.xlu0 %2106  ;;  %v2114_v14 = vsub.f32 %v6397_v15, %v2094_v6  ;;  %v5698_v23 = vld [vmem:[#allocation8 + $0x2cc] ss:$16 sps:$4 sm:$0xff]   ;;  %v5696_v15 = vld [vmem:[#allocation8 + $0x2c8] ss:$16 sps:$4 sm:$0xff]  }
 0x2b0   :  { %v2108_v8 = vmul.f32 0.001953125, %v2107_v63  ;;  %v5747_v6 = vld [vmem:[#allocation8 + $0x1a8] ss:$16 sps:$4 sm:$0xff]  }
 0x2b1   :  { %v5750_v63 = vld [vmem:[#allocation8 + $0x3a8] ss:$16 sps:$4 sm:$0xff]  }
 0x2b2   :  { %v2110_v9 = vsub.f32 %v2108_v8, %v2109_v7  ;;  %v5755_v7 = vld [vmem:[#allocation8 + $0x18c] ss:$16 sps:$4 sm:$0xff]  }
 0x2b3   :  { %v5758_v8 = vld [vmem:[#allocation8 + $0x38c] ss:$16 sps:$4 sm:$0xff]  }
 0x2b4   :  { %v2111_v60 = vmax.f32 %v2110_v9, 0.0  ;;  %v5753_v9 = vld [vmem:[#allocation8 + $0x188] ss:$16 sps:$4 sm:$0xff]  }
 0x2b6   :  { %v2116_v10 = vadd.f32 1e-05, %v2111_v60  ;;  %v5756_v60 = vld [vmem:[#allocation8 + $0x388] ss:$16 sps:$4 sm:$0xff]  }
 0x2b8   :  { %6015 = vrsqrt.f32 %v2116_v10  ;;  %v5761_v10 = vld [vmem:[#allocation8 + $0x16c] ss:$16 sps:$4 sm:$0xff]  }
 0x2c5   :  { %v6016_v18 = vpop.eup %6015 }
 0x2c6   :  { %v2119_v19 = vmul.f32 %v6016_v18, %v2113_v11  ;;  %v2121_v20 = vmul.f32 %v6016_v18, %v2115_v12  ;;  %v2118_v21 = vmul.f32 %v6016_v18, %v2112_v13  ;;  %v2120_v22 = vmul.f32 %v6016_v18, %v2114_v14  ;;  %v5764_v11 = vld [vmem:[#allocation8 + $0x36c] ss:$16 sps:$4 sm:$0xff]   ;;  %v5759_v12 = vld [vmem:[#allocation8 + $0x168] ss:$16 sps:$4 sm:$0xff]  }
 0x2c7   :  { %v5762_v13 = vld [vmem:[#allocation8 + $0x368] ss:$16 sps:$4 sm:$0xff]   ;;  %v5767_v14 = vld [vmem:[#allocation8 + $0x14c] ss:$16 sps:$4 sm:$0xff]  }
 0x2c8   :  { %v2123_v24 = vpack.c.bf16 %v2119_v19, %v2119_v19  ;;  %v2125_v25 = vpack.c.bf16 %v2121_v20, %v2121_v20  ;;  %v6416_v28 = vpack.c.bf16 %v2118_v21, %v2118_v21  ;;  %v6418_v29 = vpack.c.bf16 %v2120_v22, %v2120_v22  ;;  %v5770_v18 = vld [vmem:[#allocation8 + $0x34c] ss:$16 sps:$4 sm:$0xff]   ;;  %v5765_v19 = vld [vmem:[#allocation8 + $0x148] ss:$16 sps:$4 sm:$0xff]  }
 0x2c9   :  { %v5768_v20 = vld [vmem:[#allocation8 + $0x348] ss:$16 sps:$4 sm:$0xff]   ;;  %v5773_v21 = vld [vmem:[#allocation8 + $0x12c] ss:$16 sps:$4 sm:$0xff]  }
 0x2ca   :  { %2948 = vmatprep.mubr.bf16.mxu0 %v2123_v24  ;;  %2989 = vmatprep.mubr.bf16.mxu1 %v2125_v25  ;;  %v5776_v22 = vld [vmem:[#allocation8 + $0x32c] ss:$16 sps:$4 sm:$0xff]  }
 0x2cb   :  { %2949 = vmatmul.mubr.bf16.vlgmr.msra.gmra.mxu0 %v6416_v28  ;;  %2990 = vmatmul.mubr.bf16.vlgmr.msra.gmra.mxu1 %v6418_v29 }
 0x2cc   :  { %2999 = vmatpush1.bf16.msra.mxu0 %v5687_v26  ;;  %3040 = vmatpush1.bf16.msra.mxu1 %v5690_v27  ;;  %v5779_v26 = vld [vmem:[#allocation8 + $0x10c] ss:$16 sps:$4 sm:$0xff]  }
 0x2cd   :  { %3030 = vmatprep.mubr.bf16.mxu0 %v2123_v24  ;;  %3071 = vmatprep.mubr.bf16.mxu1 %v2125_v25  ;;  %v5771_v24 = vld [vmem:[#allocation8 + $0x128] ss:$16 sps:$4 sm:$0xff]   ;;  %v5782_v27 = vld [vmem:[#allocation8 + $0x30c] ss:$16 sps:$4 sm:$0xff]  }
 0x2ce   :  { %3000 = vmatprep.subr.bf16.mxu0 %v5695_v59  ;;  %3041 = vmatprep.subr.bf16.mxu1 %v5698_v23  ;;  %v5774_v25 = vld [vmem:[#allocation8 + $0x328] ss:$16 sps:$4 sm:$0xff]  }
 0x2cf   :  { %v5777_v59 = vld [vmem:[#allocation8 + $0x108] ss:$16 sps:$4 sm:$0xff]  }
 0x2d0   :  { %3001 = vmatpush1.bf16.msra.mxu0 %v5693_v32  ;;  %3042 = vmatpush1.bf16.msra.mxu1 %v5696_v15  ;;  %v5780_v23 = vld [vmem:[#allocation8 + $0x308] ss:$16 sps:$4 sm:$0xff]   ;;  %v5785_v32 = vld [vmem:[#allocation10 + $0xe4] ss:$16 sps:$4 sm:$0xff]   ;;  %v5783_v15 = vld [vmem:[#allocation10 + $0xe0] ss:$16 sps:$4 sm:$0xff]  }
 0x2d1   :  { %3002 = vmatprep.subr.bf16.mxu0 %v5701_v30  ;;  %3043 = vmatprep.subr.bf16.mxu1 %v5704_v33  ;;  %v5788_v30 = vld [vmem:[#allocation10 + $0xc4] ss:$16 sps:$4 sm:$0xff]   ;;  %v5786_v33 = vld [vmem:[#allocation10 + $0xc0] ss:$16 sps:$4 sm:$0xff]  }
 0x2d4   :  { %3003 = vmatpush1.bf16.msra.mxu0 %v5699_v34  ;;  %3044 = vmatpush1.bf16.msra.mxu1 %v5702_v35  ;;  %v5791_v34 = vld [vmem:[#allocation10 + $0xa4] ss:$16 sps:$4 sm:$0xff]   ;;  %v5789_v35 = vld [vmem:[#allocation10 + $0xa0] ss:$16 sps:$4 sm:$0xff]  }
 0x2d5   :  { %3004 = vmatprep.subr.bf16.mxu0 %v5707_v36  ;;  %3045 = vmatprep.subr.bf16.mxu1 %v5710_v37  ;;  %v5794_v36 = vld [vmem:[#allocation10 + $0x84] ss:$16 sps:$4 sm:$0xff]   ;;  %v5831_v37 = vld [vmem:[#allocation10 + $0x2e0] ss:$16 sps:$4 sm:$0xff]  }
 0x2d8   :  { %3005 = vmatpush1.bf16.msra.mxu0 %v5705_v38  ;;  %3046 = vmatpush1.bf16.msra.mxu1 %v5708_v39  ;;  %v5833_v38 = vld [vmem:[#allocation10 + $0x2e4] ss:$16 sps:$4 sm:$0xff]   ;;  %v5792_v39 = vld [vmem:[#allocation10 + $0x80] ss:$16 sps:$4 sm:$0xff]  }
 0x2d9   :  { %3006 = vmatprep.subr.bf16.mxu0 %v5713_v40  ;;  %3047 = vmatprep.subr.bf16.mxu1 %v5716_v45  ;;  %v5797_v40 = vld [vmem:[#allocation10 + $0x64] ss:$16 sps:$4 sm:$0xff]   ;;  %v5837_v45 = vld [vmem:[#allocation10 + $0x2c0] ss:$16 sps:$4 sm:$0xff]  }
 0x2dc   :  { %3007 = vmatpush1.bf16.msra.mxu0 %v5711_v46  ;;  %3048 = vmatpush1.bf16.msra.mxu1 %v5714_v47  ;;  %v5839_v46 = vld [vmem:[#allocation10 + $0x2c4] ss:$16 sps:$4 sm:$0xff]   ;;  %v5798_v47 = vld [vmem:[#allocation10 + $0x40] ss:$16 sps:$4 sm:$0xff]  }
 0x2dd   :  { %3008 = vmatprep.subr.bf16.mxu0 %v5719_v48  ;;  %3049 = vmatprep.subr.bf16.mxu1 %v5722_v50  ;;  %v5803_v48 = vld [vmem:[#allocation10 + $0x24] ss:$16 sps:$4 sm:$0xff]   ;;  %v5843_v50 = vld [vmem:[#allocation10 + $0x2a0] ss:$16 sps:$4 sm:$0xff]  }
 0x2e0   :  { %3009 = vmatpush1.bf16.msra.mxu0 %v5717_v62  ;;  %3050 = vmatpush1.bf16.msra.mxu1 %v5720_v3  ;;  %v5845_v62 = vld [vmem:[#allocation10 + $0x2a4] ss:$16 sps:$4 sm:$0xff]   ;;  %v5801_v3 = vld [vmem:[#allocation10 + $0x20] ss:$16 sps:$4 sm:$0xff]  }
 0x2e1   :  { %3010 = vmatprep.subr.bf16.mxu0 %v5725_v51  ;;  %3051 = vmatprep.subr.bf16.mxu1 %v5728_v16  ;;  %v5806_v51 = vld [vmem:[#allocation10 + $0x4] ss:$16 sps:$4 sm:$0xff]   ;;  %v5849_v16 = vld [vmem:[#allocation10 + $0x280] ss:$16 sps:$4 sm:$0xff]  }
 0x2e4   :  { %3011 = vmatpush1.bf16.msra.mxu0 %v5723_v17  ;;  %3052 = vmatpush1.bf16.msra.mxu1 %v5726_v55  ;;  %v5851_v17 = vld [vmem:[#allocation10 + $0x284] ss:$16 sps:$4 sm:$0xff]   ;;  %v5804_v55 = vld [vmem:[#allocation10] ss:$16 sps:$4 sm:$0xff]  }
 0x2e5   :  { %3012 = vmatprep.subr.bf16.mxu0 %v5731_v56  ;;  %3053 = vmatprep.subr.bf16.mxu1 %v5734_v58  ;;  %v5809_v56 = vld [vmem:[#allocation10 + $0x1e4] ss:$16 sps:$4 sm:$0xff]   ;;  %v5855_v58 = vld [vmem:[#allocation10 + $0x260] ss:$16 sps:$4 sm:$0xff]  }
 0x2e8   :  { %3013 = vmatpush1.bf16.msra.mxu0 %v5729_v53  ;;  %3054 = vmatpush1.bf16.msra.mxu1 %v5732_v57  ;;  %v5857_v53 = vld [vmem:[#allocation10 + $0x264] ss:$16 sps:$4 sm:$0xff]   ;;  %v5807_v57 = vld [vmem:[#allocation10 + $0x1e0] ss:$16 sps:$4 sm:$0xff]  }
 0x2e9   :  { %3014 = vmatprep.subr.bf16.mxu0 %v5737_v49  ;;  %3055 = vmatprep.subr.bf16.mxu1 %v5740_v43  ;;  %v5812_v49 = vld [vmem:[#allocation10 + $0x1c4] ss:$16 sps:$4 sm:$0xff]   ;;  %v5861_v43 = vld [vmem:[#allocation10 + $0x240] ss:$16 sps:$4 sm:$0xff]  }
 0x2ec   :  { %3015 = vmatpush2.bf16.msra.mxu0 %v5735_v31  ;;  %3056 = vmatpush2.bf16.msra.mxu1 %v5738_v61  ;;  %v5863_v31 = vld [vmem:[#allocation10 + $0x244] ss:$16 sps:$4 sm:$0xff]   ;;  %v5810_v61 = vld [vmem:[#allocation10 + $0x1c0] ss:$16 sps:$4 sm:$0xff]  }
 0x2ed   :  { %3016 = vmatprep.subr.bf16.mxu0 %v5743_v41  ;;  %3057 = vmatprep.subr.bf16.mxu1 %v5746_v0  ;;  %v5815_v41 = vld [vmem:[#allocation10 + $0x1a4] ss:$16 sps:$4 sm:$0xff]   ;;  %v5867_v0 = vld [vmem:[#allocation10 + $0x220] ss:$16 sps:$4 sm:$0xff]  }
 0x2f0   :  { %3017 = vmatpush2.bf16.msra.mxu0 %v5741_v1  ;;  %3058 = vmatpush2.bf16.msra.mxu1 %v5744_v2  ;;  %v5869_v1 = vld [vmem:[#allocation10 + $0x224] ss:$16 sps:$4 sm:$0xff]   ;;  %v5813_v2 = vld [vmem:[#allocation10 + $0x1a0] ss:$16 sps:$4 sm:$0xff]  }
 0x2f1   :  { %3018 = vmatprep.subr.bf16.mxu0 %v5749_v4  ;;  %3059 = vmatprep.subr.bf16.mxu1 %v5752_v5  ;;  %v5818_v4 = vld [vmem:[#allocation10 + $0x184] ss:$16 sps:$4 sm:$0xff]   ;;  %v5873_v5 = vld [vmem:[#allocation10 + $0x200] ss:$16 sps:$4 sm:$0xff]  }
 0x2f4   :  { %3019 = vmatpush2.bf16.msra.mxu0 %v5747_v6  ;;  %3060 = vmatpush2.bf16.msra.mxu1 %v5750_v63  ;;  %v5875_v6 = vld [vmem:[#allocation10 + $0x204] ss:$16 sps:$4 sm:$0xff]   ;;  %v5816_v63 = vld [vmem:[#allocation10 + $0x180] ss:$16 sps:$4 sm:$0xff]  }
 0x2f5   :  { %3020 = vmatprep.subr.bf16.mxu0 %v5755_v7  ;;  %3061 = vmatprep.subr.bf16.mxu1 %v5758_v8  ;;  %v5821_v7 = vld [vmem:[#allocation10 + $0x164] ss:$16 sps:$4 sm:$0xff]   ;;  %v5879_v8 = vld [vmem:[#allocation10 + $0x3e0] ss:$16 sps:$4 sm:$0xff]  }
 0x2f8   :  { %3021 = vmatpush2.bf16.msra.mxu0 %v5753_v9  ;;  %3062 = vmatpush2.bf16.msra.mxu1 %v5756_v60  ;;  %v5881_v9 = vld [vmem:[#allocation10 + $0x3e4] ss:$16 sps:$4 sm:$0xff]   ;;  %v5819_v60 = vld [vmem:[#allocation10 + $0x160] ss:$16 sps:$4 sm:$0xff]  }
 0x2f9   :  { %3022 = vmatprep.subr.bf16.mxu0 %v5761_v10  ;;  %3063 = vmatprep.subr.bf16.mxu1 %v5764_v11  ;;  %v5824_v10 = vld [vmem:[#allocation10 + $0x144] ss:$16 sps:$4 sm:$0xff]   ;;  %v5885_v11 = vld [vmem:[#allocation10 + $0x3c0] ss:$16 sps:$4 sm:$0xff]  }
 0x2fc   :  { %3023 = vmatpush2.bf16.msra.mxu0 %v5759_v12  ;;  %3064 = vmatpush2.bf16.msra.mxu1 %v5762_v13  ;;  %v5887_v12 = vld [vmem:[#allocation10 + $0x3c4] ss:$16 sps:$4 sm:$0xff]   ;;  %v5822_v13 = vld [vmem:[#allocation10 + $0x140] ss:$16 sps:$4 sm:$0xff]  }
 0x2fd   :  { %3024 = vmatprep.subr.bf16.mxu0 %v5767_v14  ;;  %3065 = vmatprep.subr.bf16.mxu1 %v5770_v18  ;;  %v5827_v14 = vld [vmem:[#allocation10 + $0x124] ss:$16 sps:$4 sm:$0xff]   ;;  %v5891_v18 = vld [vmem:[#allocation10 + $0x3a0] ss:$16 sps:$4 sm:$0xff]  }
 0x300   :  { %3025 = vmatpush2.bf16.msra.mxu0 %v5765_v19  ;;  %3066 = vmatpush2.bf16.msra.mxu1 %v5768_v20  ;;  %v5893_v19 = vld [vmem:[#allocation10 + $0x3a4] ss:$16 sps:$4 sm:$0xff]   ;;  %v5825_v20 = vld [vmem:[#allocation10 + $0x120] ss:$16 sps:$4 sm:$0xff]  }
 0x301   :  { %3026 = vmatprep.subr.bf16.mxu0 %v5773_v21  ;;  %3067 = vmatprep.subr.bf16.mxu1 %v5776_v22  ;;  %v5830_v21 = vld [vmem:[#allocation10 + $0x104] ss:$16 sps:$4 sm:$0xff]   ;;  %v5897_v22 = vld [vmem:[#allocation10 + $0x380] ss:$16 sps:$4 sm:$0xff]  }
 0x304   :  { %3027 = vmatpush2.bf16.msra.mxu0 %v5771_v24  ;;  %3068 = vmatpush2.bf16.msra.mxu1 %v5774_v25  ;;  %v5899_v24 = vld [vmem:[#allocation10 + $0x384] ss:$16 sps:$4 sm:$0xff]   ;;  %v5828_v25 = vld [vmem:[#allocation10 + $0x100] ss:$16 sps:$4 sm:$0xff]  }
 0x305   :  { %3028 = vmatprep.subr.bf16.mxu0 %v5779_v26  ;;  %3069 = vmatprep.subr.bf16.mxu1 %v5782_v27  ;;  %v5836_v26 = vld [vmem:[#allocation10 + $0xec] ss:$16 sps:$4 sm:$0xff]   ;;  %v5903_v27 = vld [vmem:[#allocation10 + $0x360] ss:$16 sps:$4 sm:$0xff]  }
 0x308   :  { %3029 = vmatpush2.bf16.msra.mxu0 %v5777_v59  ;;  %3070 = vmatpush2.bf16.msra.mxu1 %v5780_v23  ;;  %v5905_v59 = vld [vmem:[#allocation10 + $0x364] ss:$16 sps:$4 sm:$0xff]  }
 0x309   :  { %3886 = vmatprep.subr.bf16.mxu0 %v5785_v32  ;;  %3927 = vmatprep.subr.bf16.mxu1 %v5833_v38  ;;  %v5911_v23 = vld [vmem:[#allocation10 + $0x344] ss:$16 sps:$4 sm:$0xff]   ;;  %v5909_v32 = vld [vmem:[#allocation10 + $0x340] ss:$16 sps:$4 sm:$0xff]  }
 0x30b   :  { %3031 = vmatmul.mubr.bf16.vlgmr.msra.gmra.mxu0 %v6416_v28  ;;  %3072 = vmatmul.mubr.bf16.vlgmr.msra.gmra.mxu1 %v6418_v29  ;;  %v5795_v28 = vld [vmem:[#allocation10 + $0x60] ss:$16 sps:$4 sm:$0xff]   ;;  %v5800_v29 = vld [vmem:[#allocation10 + $0x44] ss:$16 sps:$4 sm:$0xff]  }
 0x30c   :  { %3887 = vmatpush1.bf16.msra.mxu0 %v5783_v15  ;;  %3928 = vmatpush1.bf16.msra.mxu1 %v5831_v37  ;;  %v5917_v15 = vld [vmem:[#allocation10 + $0x324] ss:$16 sps:$4 sm:$0xff]  }
 0x30d   :  { %3888 = vmatprep.subr.bf16.mxu0 %v5788_v30  ;;  %3929 = vmatprep.subr.bf16.mxu1 %v5839_v46  ;;  %v5915_v30 = vld [vmem:[#allocation10 + $0x320] ss:$16 sps:$4 sm:$0xff]  }
 0x310   :  { %3889 = vmatpush1.bf16.msra.mxu0 %v5786_v33  ;;  %3930 = vmatpush1.bf16.msra.mxu1 %v5837_v45  ;;  %v5923_v33 = vld [vmem:[#allocation10 + $0x304] ss:$16 sps:$4 sm:$0xff]  }
 0x311   :  { %3890 = vmatprep.subr.bf16.mxu0 %v5791_v34  ;;  %3931 = vmatprep.subr.bf16.mxu1 %v5845_v62  ;;  %v5921_v34 = vld [vmem:[#allocation10 + $0x300] ss:$16 sps:$4 sm:$0xff]  }
 0x314   :  { %3891 = vmatpush1.bf16.msra.mxu0 %v5789_v35  ;;  %3932 = vmatpush1.bf16.msra.mxu1 %v5843_v50  ;;  %v5929_v35 = vld [vmem:[#allocation10 + $0x2ec] ss:$16 sps:$4 sm:$0xff]  }
 0x315   :  { %3892 = vmatprep.subr.bf16.mxu0 %v5794_v36  ;;  %3933 = vmatprep.subr.bf16.mxu1 %v5851_v17  ;;  %v6427_v36 = vld [vmem:[%s6466_s4] sm:$0xf] }
 0x316   :  { %v2259_v37 = vrot.slane %v6427_v36, %v6353_v42  ;;  %v2263_v38 = vrot.slane %v6427_v36, %v6356_v44 }
 0x318   :  { %3893 = vmatpush1.bf16.msra.mxu0 %v5792_v39  ;;  %3934 = vmatpush1.bf16.msra.mxu1 %v5849_v16 }
 0x319   :  { %3894 = vmatprep.subr.bf16.mxu0 %v5797_v40  ;;  %3935 = vmatprep.subr.bf16.mxu1 %v5857_v53  ;;  %v5834_v53 = vld [vmem:[#allocation10 + $0xe8] ss:$16 sps:$4 sm:$0xff]  }
 0x31c   :  { %3895 = vmatpush1.bf16.msra.mxu0 %v5795_v28  ;;  %3936 = vmatpush1.bf16.msra.mxu1 %v5855_v58 }
 0x31d   :  { %3896 = vmatprep.subr.bf16.mxu0 %v5800_v29  ;;  %3937 = vmatprep.subr.bf16.mxu1 %v5863_v31  ;;  %v5848_v31 = vld [vmem:[#allocation10 + $0xac] ss:$16 sps:$4 sm:$0xff]  }
 0x320   :  { %3897 = vmatpush1.bf16.msra.mxu0 %v5798_v47  ;;  %3938 = vmatpush1.bf16.msra.mxu1 %v5861_v43  ;;  %v5840_v43 = vld [vmem:[#allocation10 + $0xc8] ss:$16 sps:$4 sm:$0xff]  }
 0x321   :  { %3898 = vmatprep.subr.bf16.mxu0 %v5803_v48  ;;  %3939 = vmatprep.subr.bf16.mxu1 %v5869_v1  ;;  %v5860_v1 = vld [vmem:[#allocation10 + $0x6c] ss:$16 sps:$4 sm:$0xff]  }
 0x324   :  { %3899 = vmatpush1.bf16.msra.mxu0 %v5801_v3  ;;  %3940 = vmatpush1.bf16.msra.mxu1 %v5867_v0  ;;  %v5852_v0 = vld [vmem:[#allocation10 + $0x88] ss:$16 sps:$4 sm:$0xff]  }
 0x325   :  { %3900 = vmatprep.subr.bf16.mxu0 %v5806_v51  ;;  %3941 = vmatprep.subr.bf16.mxu1 %v5875_v6  ;;  %v5872_v6 = vld [vmem:[#allocation10 + $0x2c] ss:$16 sps:$4 sm:$0xff]  }
 0x328   :  { %3901 = vmatpush1.bf16.msra.mxu0 %v5804_v55  ;;  %3942 = vmatpush1.bf16.msra.mxu1 %v5873_v5  ;;  %v5864_v5 = vld [vmem:[#allocation10 + $0x48] ss:$16 sps:$4 sm:$0xff]  }
 0x329   :  { %3902 = vmatprep.subr.bf16.mxu0 %v5809_v56  ;;  %3943 = vmatprep.subr.bf16.mxu1 %v5881_v9  ;;  %v5884_v9 = vld [vmem:[#allocation10 + $0x1ec] ss:$16 sps:$4 sm:$0xff]  }
 0x32c   :  { %3903 = vmatpush2.bf16.msra.mxu0 %v5807_v57  ;;  %3944 = vmatpush2.bf16.msra.mxu1 %v5879_v8  ;;  %v5876_v8 = vld [vmem:[#allocation10 + $0x8] ss:$16 sps:$4 sm:$0xff]  }
 0x32d   :  { %3904 = vmatprep.subr.bf16.mxu0 %v5812_v49  ;;  %3945 = vmatprep.subr.bf16.mxu1 %v5887_v12  ;;  %v5842_v49 = vld [vmem:[#allocation10 + $0xcc] ss:$16 sps:$4 sm:$0xff]  }
 0x32e   :  { %v5896_v12 = vld [vmem:[#allocation10 + $0x1ac] ss:$16 sps:$4 sm:$0xff]  }
 0x330   :  { %3905 = vmatpush2.bf16.msra.mxu0 %v5810_v61  ;;  %3946 = vmatpush2.bf16.msra.mxu1 %v5885_v11  ;;  %v5846_v61 = vld [vmem:[#allocation10 + $0xa8] ss:$16 sps:$4 sm:$0xff]  }
 0x331   :  { %3906 = vmatprep.subr.bf16.mxu0 %v5815_v41  ;;  %3947 = vmatprep.subr.bf16.mxu1 %v5893_v19  ;;  %v5854_v41 = vld [vmem:[#allocation10 + $0x8c] ss:$16 sps:$4 sm:$0xff]   ;;  %v5888_v11 = vld [vmem:[#allocation10 + $0x1c8] ss:$16 sps:$4 sm:$0xff]  }
 0x332   :  { %v5908_v19 = vld [vmem:[#allocation10 + $0x16c] ss:$16 sps:$4 sm:$0xff]  }
 0x334   :  { %3907 = vmatpush2.bf16.msra.mxu0 %v5813_v2  ;;  %3948 = vmatpush2.bf16.msra.mxu1 %v5891_v18  ;;  %v5858_v2 = vld [vmem:[#allocation10 + $0x68] ss:$16 sps:$4 sm:$0xff]  }
 0x335   :  { %3908 = vmatprep.subr.bf16.mxu0 %v5818_v4  ;;  %3949 = vmatprep.subr.bf16.mxu1 %v5899_v24  ;;  %v5866_v4 = vld [vmem:[#allocation10 + $0x4c] ss:$16 sps:$4 sm:$0xff]   ;;  %v5900_v18 = vld [vmem:[#allocation10 + $0x188] ss:$16 sps:$4 sm:$0xff]  }
 0x336   :  { %v5912_v24 = vld [vmem:[#allocation10 + $0x148] ss:$16 sps:$4 sm:$0xff]  }
 0x338   :  { %3909 = vmatpush2.bf16.msra.mxu0 %v5816_v63  ;;  %3950 = vmatpush2.bf16.msra.mxu1 %v5897_v22  ;;  %v5870_v63 = vld [vmem:[#allocation10 + $0x28] ss:$16 sps:$4 sm:$0xff]   ;;  %v2267_v22 = vrot.slane %v6427_v36, %v6369_v52 }
 0x339   :  { %3910 = vmatprep.subr.bf16.mxu0 %v5821_v7  ;;  %3951 = vmatprep.subr.bf16.mxu1 %v5905_v59  ;;  %v5878_v7 = vld [vmem:[#allocation10 + $0xc] ss:$16 sps:$4 sm:$0xff]  }
 0x33c   :  { %3911 = vmatpush2.bf16.msra.mxu0 %v5819_v60  ;;  %3952 = vmatpush2.bf16.msra.mxu1 %v5903_v27  ;;  %v5882_v60 = vld [vmem:[#allocation10 + $0x1e8] ss:$16 sps:$4 sm:$0xff]  }
 0x33d   :  { %3912 = vmatprep.subr.bf16.mxu0 %v5824_v10  ;;  %3953 = vmatprep.subr.bf16.mxu1 %v5911_v23  ;;  %v5890_v10 = vld [vmem:[#allocation10 + $0x1cc] ss:$16 sps:$4 sm:$0xff]  }
 0x340   :  { %3913 = vmatpush2.bf16.msra.mxu0 %v5822_v13  ;;  %3954 = vmatpush2.bf16.msra.mxu1 %v5909_v32  ;;  %v5894_v13 = vld [vmem:[#allocation10 + $0x1a8] ss:$16 sps:$4 sm:$0xff]  }
 0x341   :  { %3914 = vmatprep.subr.bf16.mxu0 %v5827_v14  ;;  %3955 = vmatprep.subr.bf16.mxu1 %v5917_v15  ;;  %v5902_v14 = vld [vmem:[#allocation10 + $0x18c] ss:$16 sps:$4 sm:$0xff]  }
 0x344   :  { %3915 = vmatpush2.bf16.msra.mxu0 %v5825_v20  ;;  %3956 = vmatpush2.bf16.msra.mxu1 %v5915_v30  ;;  %v5906_v20 = vld [vmem:[#allocation10 + $0x168] ss:$16 sps:$4 sm:$0xff]  }
 0x345   :  { %3916 = vmatprep.subr.bf16.mxu0 %v5830_v21  ;;  %3957 = vmatprep.subr.bf16.mxu1 %v5923_v33  ;;  %v5914_v21 = vld [vmem:[#allocation10 + $0x14c] ss:$16 sps:$4 sm:$0xff]   ;;  %v5918_v30 = vld [vmem:[#allocation10 + $0x128] ss:$16 sps:$4 sm:$0xff]  }
 0x348   :  { %3917 = vmatpush2.bf16.msra.mxu0 %v5828_v25  ;;  %3958 = vmatpush2.bf16.msra.mxu1 %v5921_v34  ;;  %v2271_v25 = vrot.slane %v6427_v36, %v6372_v54  ;;  %v5924_v36 = vld [vmem:[#allocation10 + $0x108] ss:$16 sps:$4 sm:$0xff]  }
 0x349   :  { %3968 = vmatprep.subr.bf16.mxu0 %v5836_v26  ;;  %4009 = vmatprep.subr.bf16.mxu1 %v5929_v35  ;;  %v5920_v26 = vld [vmem:[#allocation10 + $0x12c] ss:$16 sps:$4 sm:$0xff]  }
 0x34a   :  { %v5926_v35 = vld [vmem:[#allocation10 + $0x10c] ss:$16 sps:$4 sm:$0xff]  }
 0x38b   :  { %v2950_v39 = vpop.f32.mrf.mxu0  ;;  %v2991_v40 = vpop.f32.mrf.mxu1 }
 0x38c   :  { %v2951_v28 = vadd.f32 %v2950_v39, %v2259_v37 }
 0x38d   :  { %v2952_v29 = vpop.f32.mrf.mxu0  ;;  %v2993_v45 = vpop.f32.mrf.mxu1 }
 0x38e   :  { %v2992_v46 = vadd.f32 %v2991_v40, %v2951_v28  ;;  %v2953_v47 = vadd.f32 %v2952_v29, %v2263_v38 }
 0x38f   :  { %v2954_v48 = vpop.f32.mrf.mxu0  ;;  %v2995_v50 = vpop.f32.mrf.mxu1 }
 0x390   :  { %vm3080_vm5 = vcmp.gt.f32.partialorder %v2992_v46, 0.0  ;;  %v3084_v62 = vmul.f32 0.01, %v2992_v46  ;;  %v2994_v3 = vadd.f32 %v2993_v45, %v2953_v47  ;;  %v5927_v50 = vld [vmem:[#allocation10 + $0x2e8] ss:$16 sps:$4 sm:$0xff]  }
 0x391   :  { %v2955_v51 = vpop.f32.mrf.mxu0  ;;  %v2996_v16 = vpop.f32.mrf.mxu1 }
 0x392   :  { %vm3081_vm6 = vcmp.gt.f32.partialorder %v2994_v3, 0.0  ;;  %v3085_v17 = vmul.f32 0.01, %v2994_v3  ;;  %v3088_v55 = vsel %vm3080_vm5, %v2992_v46, %v3084_v62  ;;  %v5930_v51 = vld [vmem:[#allocation10 + $0x2c8] ss:$16 sps:$4 sm:$0xff]  }
 0x393   :  { %v6433_v57 = vpack.c.bf16 %v3088_v55, %v3088_v55  ;;  %v5935_v16 = vld [vmem:[#allocation10 + $0x2ac] ss:$16 sps:$4 sm:$0xff]  }
 0x394   :  { %v3089_v56 = vsel %vm3081_vm6, %v2994_v3, %v3085_v17  ;;  %v5932_v3 = vld [vmem:[#allocation10 + $0x2cc] ss:$16 sps:$4 sm:$0xff]   ;;  %v5933_v17 = vld [vmem:[#allocation10 + $0x2a8] ss:$16 sps:$4 sm:$0xff]  }
 0x395   :  { %v3093_v58 = vpack.c.bf16 %v3089_v56, %v3089_v56  ;;  %v5938_v55 = vld [vmem:[#allocation10 + $0x28c] ss:$16 sps:$4 sm:$0xff]  }
 0x396   :  { %v5975_v56 = vld [vmem:[#allocation11 + $0x78] sm:$0xff]  }
 0x397   :  { %3918 = vmatprep.mubr.bf16.mxu0 %v3093_v58 }
 0x398   :  { %3919 = vmatmul.mubr.bf16.vlgmr.msra.gmra.mxu0 %v6433_v57 }
 0x399   :  { %3969 = vmatpush1.bf16.msra.mxu0 %v5834_v53  ;;  %4000 = vmatprep.mubr.bf16.mxu0 %v3093_v58  ;;  %v5976_v58 = vld [vmem:[#allocation11 + $0x38] sm:$0xff]   ;;  %v5977_v53 = vld [vmem:[#allocation11 + $0x70] sm:$0xff]  }
 0x39a   :  { %3970 = vmatprep.subr.bf16.mxu0 %v5842_v49  ;;  %v5936_v49 = vld [vmem:[#allocation10 + $0x288] ss:$16 sps:$4 sm:$0xff]  }
 0x39d   :  { %3971 = vmatpush1.bf16.msra.mxu0 %v5840_v43  ;;  %v5978_v43 = vld [vmem:[#allocation11 + $0x30] sm:$0xff]  }
 0x39e   :  { %3972 = vmatprep.subr.bf16.mxu0 %v5848_v31  ;;  %v5941_v31 = vld [vmem:[#allocation10 + $0x26c] ss:$16 sps:$4 sm:$0xff]  }
 0x3a1   :  { %3973 = vmatpush1.bf16.msra.mxu0 %v5846_v61  ;;  %v5939_v61 = vld [vmem:[#allocation10 + $0x268] ss:$16 sps:$4 sm:$0xff]  }
 0x3a2   :  { %3974 = vmatprep.subr.bf16.mxu0 %v5854_v41  ;;  %v5980_v41 = vld [vmem:[#allocation11 + $0x28] sm:$0xff]  }
 0x3a5   :  { %3975 = vmatpush1.bf16.msra.mxu0 %v5852_v0  ;;  %v5944_v0 = vld [vmem:[#allocation10 + $0x24c] ss:$16 sps:$4 sm:$0xff]  }
 0x3a6   :  { %3976 = vmatprep.subr.bf16.mxu0 %v5860_v1  ;;  %v5981_v1 = vld [vmem:[#allocation11 + $0x60] sm:$0xff]  }
 0x3a9   :  { %3977 = vmatpush1.bf16.msra.mxu0 %v5858_v2  ;;  %v5942_v2 = vld [vmem:[#allocation10 + $0x248] ss:$16 sps:$4 sm:$0xff]  }
 0x3aa   :  { %3978 = vmatprep.subr.bf16.mxu0 %v5866_v4  ;;  %v5982_v4 = vld [vmem:[#allocation11 + $0x20] sm:$0xff]  }
 0x3ad   :  { %3979 = vmatpush1.bf16.msra.mxu0 %v5864_v5  ;;  %v5947_v5 = vld [vmem:[#allocation10 + $0x22c] ss:$16 sps:$4 sm:$0xff]  }
 0x3ae   :  { %3980 = vmatprep.subr.bf16.mxu0 %v5872_v6  ;;  %v5983_v6 = vld [vmem:[#allocation11 + $0x58] sm:$0xff]  }
 0x3b1   :  { %3981 = vmatpush1.bf16.msra.mxu0 %v5870_v63  ;;  %v5945_v63 = vld [vmem:[#allocation10 + $0x228] ss:$16 sps:$4 sm:$0xff]  }
 0x3b2   :  { %3982 = vmatprep.subr.bf16.mxu0 %v5878_v7  ;;  %v5984_v7 = vld [vmem:[#allocation11 + $0x18] sm:$0xff]  }
 0x3b5   :  { %3983 = vmatpush1.bf16.msra.mxu0 %v5876_v8  ;;  %v5950_v8 = vld [vmem:[#allocation10 + $0x20c] ss:$16 sps:$4 sm:$0xff]  }
 0x3b6   :  { %3984 = vmatprep.subr.bf16.mxu0 %v5884_v9  ;;  %v5985_v9 = vld [vmem:[#allocation11 + $0x50] sm:$0xff]  }
 0x3b9   :  { %3985 = vmatpush2.bf16.msra.mxu0 %v5882_v60  ;;  %v5948_v60 = vld [vmem:[#allocation10 + $0x208] ss:$16 sps:$4 sm:$0xff]  }
 0x3ba   :  { %3986 = vmatprep.subr.bf16.mxu0 %v5890_v10  ;;  %v5953_v10 = vld [vmem:[#allocation10 + $0x3ec] ss:$16 sps:$4 sm:$0xff]  }
 0x3bd   :  { %3987 = vmatpush2.bf16.msra.mxu0 %v5888_v11  ;;  %v5951_v11 = vld [vmem:[#allocation10 + $0x3e8] ss:$16 sps:$4 sm:$0xff]  }
 0x3be   :  { %3988 = vmatprep.subr.bf16.mxu0 %v5896_v12  ;;  %v5956_v12 = vld [vmem:[#allocation10 + $0x3cc] ss:$16 sps:$4 sm:$0xff]  }
 0x3c1   :  { %3989 = vmatpush2.bf16.msra.mxu0 %v5894_v13  ;;  %v5954_v13 = vld [vmem:[#allocation10 + $0x3c8] ss:$16 sps:$4 sm:$0xff]  }
 0x3c2   :  { %3990 = vmatprep.subr.bf16.mxu0 %v5902_v14  ;;  %v5959_v14 = vld [vmem:[#allocation10 + $0x3ac] ss:$16 sps:$4 sm:$0xff]  }
 0x3c5   :  { %3991 = vmatpush2.bf16.msra.mxu0 %v5900_v18  ;;  %v5957_v18 = vld [vmem:[#allocation10 + $0x3a8] ss:$16 sps:$4 sm:$0xff]  }
 0x3c6   :  { %3992 = vmatprep.subr.bf16.mxu0 %v5908_v19  ;;  %v5962_v19 = vld [vmem:[#allocation10 + $0x38c] ss:$16 sps:$4 sm:$0xff]  }
 0x3c9   :  { %3993 = vmatpush2.bf16.msra.mxu0 %v5906_v20  ;;  %v5960_v20 = vld [vmem:[#allocation10 + $0x388] ss:$16 sps:$4 sm:$0xff]  }
 0x3ca   :  { %3994 = vmatprep.subr.bf16.mxu0 %v5914_v21  ;;  %v5965_v21 = vld [vmem:[#allocation10 + $0x36c] ss:$16 sps:$4 sm:$0xff]  }
 0x3cb   :  { %v3032_v27 = vpop.f32.mrf.mxu0  ;;  %v3073_v59 = vpop.f32.mrf.mxu1 }
 0x3cc   :  { %v3033_v23 = vadd.f32 %v3032_v27, %v2267_v22  ;;  %v5963_v22 = vld [vmem:[#allocation10 + $0x368] ss:$16 sps:$4 sm:$0xff]  }
 0x3cd   :  { %v3034_v32 = vpop.f32.mrf.mxu0  ;;  %v3075_v15 = vpop.f32.mrf.mxu1  ;;  %3995 = vmatpush2.bf16.msra.mxu0 %v5912_v24  ;;  %v5968_v24 = vld [vmem:[#allocation10 + $0x34c] ss:$16 sps:$4 sm:$0xff]   ;;  %v5969_v27 = vld [vmem:[#allocation10 + $0x328] ss:$16 sps:$4 sm:$0xff]  }
 0x3ce   :  { %v3074_v33 = vadd.f32 %v3073_v59, %v3033_v23  ;;  %v3035_v34 = vadd.f32 %v3034_v32, %v2271_v25  ;;  %3996 = vmatprep.subr.bf16.mxu0 %v5920_v26  ;;  %v5966_v25 = vld [vmem:[#allocation10 + $0x348] ss:$16 sps:$4 sm:$0xff]   ;;  %v5971_v26 = vld [vmem:[#allocation10 + $0x32c] ss:$16 sps:$4 sm:$0xff]   ;;  %v5986_v32 = vld [vmem:[#allocation11 + $0x10] sm:$0xff]  }
 0x3cf   :  { %v3036_v37 = vpop.f32.mrf.mxu0  ;;  %v3077_v38 = vpop.f32.mrf.mxu1  ;;  %v5974_v59 = vld [vmem:[#allocation10 + $0x30c] ss:$16 sps:$4 sm:$0xff]   ;;  %v5972_v23 = vld [vmem:[#allocation10 + $0x308] ss:$16 sps:$4 sm:$0xff]  }
 0x3d0   :  { %vm3082_vm7 = vcmp.gt.f32.partialorder %v3074_v33, 0.0  ;;  %v3086_v39 = vmul.f32 0.01, %v3074_v33  ;;  %v3076_v40 = vadd.f32 %v3075_v15, %v3035_v34  ;;  %v5987_v15 = vld [vmem:[#allocation11 + $0x48] sm:$0xff]   ;;  %v5990_v34 = vld [vmem:[#allocation11] sm:$0xff]   ;;  %v5992_v37 = vld [vmem:[#allocation11 + $0xb8] sm:$0xff]  }
 0x3d1   :  { %v3037_v28 = vpop.f32.mrf.mxu0  ;;  %v3078_v29 = vpop.f32.mrf.mxu1  ;;  %3997 = vmatpush2.bf16.msra.mxu0 %v5918_v30  ;;  %v5988_v30 = vld [vmem:[#allocation11 + $0x8] sm:$0xff]   ;;  %v5993_v38 = vld [vmem:[#allocation11 + $0xf0] sm:$0xff]  }
 0x3d2   :  { %vm3083_vm8 = vcmp.gt.f32.partialorder %v3076_v40, 0.0  ;;  %v3087_v45 = vmul.f32 0.01, %v3076_v40  ;;  %3998 = vmatprep.subr.bf16.mxu0 %v5926_v35  ;;  %v3090_v46 = vsel %vm3082_vm7, %v3074_v33, %v3086_v39  ;;  %v5989_v33 = vld [vmem:[#allocation11 + $0x40] sm:$0xff]   ;;  %v5991_v35 = vld [vmem:[#allocation11 + $0xf8] sm:$0xff]   ;;  %v5994_v39 = vld [vmem:[#allocation11 + $0xb0] sm:$0xff]  }
 0x3d3   :  { %v6440_v62 = vpack.c.bf16 %v3090_v46, %v3090_v46  ;;  %v5996_v28 = vld [vmem:[#allocation11 + $0xa8] sm:$0xff]   ;;  %v5997_v29 = vld [vmem:[#allocation11 + $0xe0] sm:$0xff]   ;;  %v6000_v46 = vld [vmem:[#allocation11 + $0x98] sm:$0xff]  }
 0x3d4   :  { %v3091_v47 = vsel %vm3083_vm8, %v3076_v40, %v3087_v45  ;;  %v5995_v40 = vld [vmem:[#allocation11 + $0xe8] sm:$0xff]   ;;  %v5999_v45 = vld [vmem:[#allocation11 + $0xd8] sm:$0xff]  }
 0x3d5   :  { %3999 = vmatpush2.bf16.msra.mxu0 %v5924_v36  ;;  %v3095_v48 = vpack.c.bf16 %v3091_v47, %v3091_v47  ;;  %v5998_v36 = vld [vmem:[#allocation11 + $0xa0] sm:$0xff]   ;;  %v6001_v47 = vld [vmem:[#allocation11 + $0xd0] sm:$0xff]  }
 0x3d6   :  { %5114 = vmatprep.subr.bf16.mxu0 %v5975_v56  ;;  %v6006_v56 = vld [vmem:[#allocation11 + $0x80] sm:$0xff]  }
 0x3d7   :  { %3959 = vmatprep.mubr.bf16.mxu1 %v3095_v48 }
 0x3d8   :  { %3960 = vmatmul.mubr.bf16.vlgmr.msra.gmra.mxu1 %v6440_v62  ;;  %4001 = vmatmul.mubr.bf16.vlgmr.msra.gmra.mxu0 %v6433_v57  ;;  %v5979_v57 = vld [vmem:[#allocation11 + $0x68] sm:$0xff]  }
 0x3d9   :  { %4010 = vmatpush1.bf16.msra.mxu1 %v5927_v50  ;;  %4041 = vmatprep.mubr.bf16.mxu1 %v3095_v48  ;;  %v6002_v48 = vld [vmem:[#allocation11 + $0x90] sm:$0xff]  }
 0x3da   :  { %4011 = vmatprep.subr.bf16.mxu1 %v5932_v3  ;;  %5115 = vmatpush3.bf16.msra.mxu0 %v5976_v58  ;;  %v3224_v58 = vld [vmem:[%s6468_s6] sm:$0xf] }
 0x3db   :  { %5116 = vmatprep.subr.bf16.mxu0 %v5977_v53  ;;  %v3229_v53 = vrot.slane %v3224_v58, %v6353_v42 }
 0x3dd   :  { %4012 = vmatpush1.bf16.msra.mxu1 %v5930_v51  ;;  %v6004_v51 = vld [vmem:[#allocation11 + $0x88] sm:$0xff]  }
 0x3de   :  { %4013 = vmatprep.subr.bf16.mxu1 %v5935_v16  ;;  %5117 = vmatpush3.bf16.msra.mxu0 %v5978_v43 }
 0x3df   :  { %5118 = vmatprep.subr.bf16.mxu0 %v5979_v57 }
 0x3e1   :  { %4014 = vmatpush1.bf16.msra.mxu1 %v5933_v17  ;;  %v6005_v17 = vld [vmem:[#allocation11 + $0xc0] sm:$0xff]  }
 0x3e2   :  { %4015 = vmatprep.subr.bf16.mxu1 %v5938_v55  ;;  %5119 = vmatpush3.bf16.msra.mxu0 %v5980_v41 }
 0x3e3   :  { %5120 = vmatprep.subr.bf16.mxu0 %v5981_v1 }
 0x3e5   :  { %4016 = vmatpush1.bf16.msra.mxu1 %v5936_v49  ;;  %v3233_v49 = vrot.slane %v3224_v58, %v6356_v44 }
 0x3e6   :  { %4017 = vmatprep.subr.bf16.mxu1 %v5941_v31  ;;  %5121 = vmatpush3.bf16.msra.mxu0 %v5982_v4 }
 0x3e7   :  { %5122 = vmatprep.subr.bf16.mxu0 %v5983_v6 }
 0x3e9   :  { %4018 = vmatpush1.bf16.msra.mxu1 %v5939_v61 }
 0x3ea   :  { %4019 = vmatprep.subr.bf16.mxu1 %v5944_v0  ;;  %5123 = vmatpush3.bf16.msra.mxu0 %v5984_v7 }
 0x3eb   :  { %5124 = vmatprep.subr.bf16.mxu0 %v5985_v9 }
 0x3ed   :  { %4020 = vmatpush1.bf16.msra.mxu1 %v5942_v2 }
 0x3ee   :  { %4021 = vmatprep.subr.bf16.mxu1 %v5947_v5  ;;  %5125 = vmatpush3.bf16.msra.mxu0 %v5986_v32  ;;  %v6008_v32 = vld [vmem:[#allocation13 + $0x30] sm:$0xff]  }
 0x3ef   :  { %5126 = vmatprep.subr.bf16.mxu0 %v5987_v15  ;;  %v6009_v15 = vld [vmem:[#allocation13 + $0x28] sm:$0xff]  }
 0x3f1   :  { %4022 = vmatpush1.bf16.msra.mxu1 %v5945_v63 }
 0x3f2   :  { %4023 = vmatprep.subr.bf16.mxu1 %v5950_v8  ;;  %5127 = vmatpush3.bf16.msra.mxu0 %v5988_v30  ;;  %v6010_v30 = vld [vmem:[#allocation13 + $0x20] sm:$0xff]  }
 0x3f3   :  { %5128 = vmatprep.subr.bf16.mxu0 %v5989_v33  ;;  %v6011_v33 = vld [vmem:[#allocation13 + $0x18] sm:$0xff]  }
 0x3f5   :  { %4024 = vmatpush1.bf16.msra.mxu1 %v5948_v60 }
 0x3f6   :  { %4025 = vmatprep.subr.bf16.mxu1 %v5953_v10  ;;  %5129 = vmatpush3.bf16.msra.mxu0 %v5990_v34  ;;  %v3237_v10 = vrot.slane %v3224_v58, %v6369_v52  ;;  %v6007_v52 = vld [vmem:[#allocation13 + $0x38] sm:$0xff]   ;;  %v6012_v34 = vld [vmem:[#allocation13 + $0x10] sm:$0xff]  }
 0x3f9   :  { %4026 = vmatpush2.bf16.msra.mxu1 %v5951_v11  ;;  %v3241_v11 = vrot.slane %v3224_v58, %v6372_v54  ;;  %v6199_v54 = vmov 0.0  }
 0x3fa   :  { %4027 = vmatprep.subr.bf16.mxu1 %v5956_v12  ;;  %5167 = vmatprep.subr.bf16.mxu0 %v6199_v54 }
 0x3fd   :  { %4028 = vmatpush2.bf16.msra.mxu1 %v5954_v13 }
 0x3fe   :  { %4029 = vmatprep.subr.bf16.mxu1 %v5959_v14 }
 0x401   :  { %4030 = vmatpush2.bf16.msra.mxu1 %v5957_v18 }
 0x402   :  { %4031 = vmatprep.subr.bf16.mxu1 %v5962_v19 }
 0x405   :  { %4032 = vmatpush2.bf16.msra.mxu1 %v5960_v20 }
 0x406   :  { %4033 = vmatprep.subr.bf16.mxu1 %v5965_v21 }
 0x409   :  { %4034 = vmatpush2.bf16.msra.mxu1 %v5963_v22 }
 0x40a   :  { %4035 = vmatprep.subr.bf16.mxu1 %v5968_v24 }
 0x40d   :  { %4036 = vmatpush2.bf16.msra.mxu1 %v5966_v25 }
 0x40e   :  { %4037 = vmatprep.subr.bf16.mxu1 %v5971_v26 }
 0x411   :  { %4038 = vmatpush2.bf16.msra.mxu1 %v5969_v27 }
 0x412   :  { %4039 = vmatprep.subr.bf16.mxu1 %v5974_v59 }
 0x415   :  { %4040 = vmatpush2.bf16.msra.mxu1 %v5972_v23 }
 0x416   :  { %5136 = vmatprep.subr.bf16.mxu1 %v5991_v35  ;;  %v6013_v35 = vld [vmem:[#allocation13 + $0x8] sm:$0xff]  }
 0x418   :  { %4042 = vmatmul.mubr.bf16.vlgmr.msra.gmra.mxu1 %v6440_v62  ;;  %v6003_v62 = vld [vmem:[#allocation11 + $0xc8] sm:$0xff]  }
 0x419   :  { %5137 = vmatpush3.bf16.msra.mxu1 %v5992_v37  ;;  %v6014_v37 = vld [vmem:[#allocation13] sm:$0xff]  }
 0x41a   :  { %5138 = vmatprep.subr.bf16.mxu1 %v5993_v38 }
 0x41d   :  { %5139 = vmatpush3.bf16.msra.mxu1 %v5994_v39 }
 0x41e   :  { %5140 = vmatprep.subr.bf16.mxu1 %v5995_v40 }
 0x421   :  { %5141 = vmatpush3.bf16.msra.mxu1 %v5996_v28 }
 0x422   :  { %5142 = vmatprep.subr.bf16.mxu1 %v5997_v29 }
 0x425   :  { %5143 = vmatpush3.bf16.msra.mxu1 %v5998_v36  ;;  %v5072_v36 = vld [vmem:[%s6470_s8] ss:$0 sm:$0xff]  ;;  %s6202_s8 = smov [#allocation14]  }
 0x426   :  { %5144 = vmatprep.subr.bf16.mxu1 %v5999_v45  ;;  %s4548_s16 = sshll.u32 %s6202_s8, 4  ;;  %s4549_s16 = int_to_ptr.vmem [resolvable:$true] %s4548_s16 }
 0x427   :  { %p6162_p8 = scmp.lt.s32.totalorder %s4549_s16, %s4549_s16 }
 0x429   :  { %5145 = vmatpush3.bf16.msra.mxu1 %v6000_v46 }
 0x42a   :  { %5146 = vmatprep.subr.bf16.mxu1 %v6001_v47 }
 0x42d   :  { %5147 = vmatpush3.bf16.msra.mxu1 %v6002_v48 }
 0x42e   :  { %5148 = vmatprep.subr.bf16.mxu1 %v6003_v62 }
 0x431   :  { %5149 = vmatpush3.bf16.msra.mxu1 %v6004_v51 }
 0x432   :  { %5150 = vmatprep.subr.bf16.mxu1 %v6005_v17 }
 0x435   :  { %5151 = vmatpush3.bf16.msra.mxu1 %v6006_v56  ;;  %v5105_v56 = vld [vmem:[%s6472_s10] ss:$0 sm:$0xff]  ;;  %s6157_s10 = scalar_lea.vmem %s4549_s16, 32 }
 0x436   :  { %p6158_p7 = scmp.ne.s32.totalorder %s4549_s16, %s6157_s10  ;;  %p6163_p9 = scmp.lt.s32.totalorder %s6157_s10, %s6157_s10 }
 0x438   :  { %p6164_p10 = por %p6163_p9, %p6162_p8 }
 0x43a   :  { %p6165_p11 = pnand %p6164_p10, %p6158_p7 }
 0x458   :  { %v3920_v50 = vpop.f32.mrf.mxu0 }
 0x459   :  { %v3921_v43 = vadd.f32 %v3920_v50, %v3229_v53 }
 0x45a   :  { %v3922_v3 = vpop.f32.mrf.mxu0 }
 0x45b   :  { %v3923_v61 = vadd.f32 %v3922_v3, %v3233_v49 }
 0x45c   :  { %v3924_v16 = vpop.f32.mrf.mxu0 }
 0x45e   :  { %v3925_v55 = vpop.f32.mrf.mxu0 }
 0x45f   :  { %v6201_v55 = vmov 6  }
 0x460   :  { %5203 = vset.pattern.permute.xlu1 %v6201_v55  ;;  %5204 = vset.pattern.permute.xlu0 %v6201_v55 }
 0x498   :  { %v3961_v31 = vpop.f32.mrf.mxu1  ;;  %v4002_v57 = vpop.f32.mrf.mxu0 }
 0x499   :  { %v3962_v41 = vadd.f32 %v3961_v31, %v3921_v43  ;;  %v4003_v12 = vadd.f32 %v4002_v57, %v3237_v10 }
 0x49a   :  { %v3963_v0 = vpop.f32.mrf.mxu1  ;;  %v4004_v1 = vpop.f32.mrf.mxu0 }
 0x49b   :  { %vm4050_vm9 = vcmp.gt.f32.partialorder %v3962_v41, 0.0  ;;  %v4054_v2 = vmul.f32 0.01, %v3962_v41  ;;  %v3964_v4 = vadd.f32 %v3963_v0, %v3923_v61  ;;  %v4005_v14 = vadd.f32 %v4004_v1, %v3241_v11 }
 0x49c   :  { %v3965_v5 = vpop.f32.mrf.mxu1  ;;  %v4006_v6 = vpop.f32.mrf.mxu0 }
 0x49d   :  { %vm4051_vm10 = vcmp.gt.f32.partialorder %v3964_v4, 0.0  ;;  %v4055_v63 = vmul.f32 0.01, %v3964_v4  ;;  %v4058_v7 = vsel %vm4050_vm9, %v3962_v41, %v4054_v2 }
 0x49e   :  { %v3966_v8 = vpop.f32.mrf.mxu1  ;;  %v4007_v9 = vpop.f32.mrf.mxu0  ;;  %v4062_v44 = vpack.c.bf16 %v4058_v7, %v4058_v7 }
 0x49f   :  { %v4059_v42 = vsel %vm4051_vm10, %v3964_v4, %v4055_v63 }
 0x4a0   :  { %v4063_v60 = vpack.c.bf16 %v4059_v42, %v4059_v42 }
 0x4a2   :  { %4361 = vmatprep.mubr.bf16.mxu0 %v4063_v60 }
 0x4a3   :  { %4362 = vmatmul.mubr.bf16.vlgmr.msra.gmra.mxu0 %v4062_v44 }
 0x4a4   :  { %5168 = vmatpush3.bf16.msra.mxu0 %v6007_v52  ;;  %5183 = vmatprep.mubr.msk.bf16.mxu0 %vm6200_vm13, %v6199_v54 }
 0x4a5   :  { %5169 = vmatprep.subr.bf16.mxu0 %v6199_v54 }
 0x4a8   :  { %5170 = vmatpush3.bf16.msra.mxu0 %v6008_v32 }
 0x4a9   :  { %5171 = vmatprep.subr.bf16.mxu0 %v6199_v54 }
 0x4ac   :  { %5172 = vmatpush3.bf16.msra.mxu0 %v6009_v15 }
 0x4ad   :  { %5173 = vmatprep.subr.bf16.mxu0 %v6199_v54 }
 0x4b0   :  { %5174 = vmatpush3.bf16.msra.mxu0 %v6010_v30 }
 0x4b1   :  { %5175 = vmatprep.subr.bf16.mxu0 %v6199_v54 }
 0x4b4   :  { %5176 = vmatpush3.bf16.msra.mxu0 %v6011_v33 }
 0x4b5   :  { %5177 = vmatprep.subr.bf16.mxu0 %v6199_v54 }
 0x4b8   :  { %5178 = vmatpush3.bf16.msra.mxu0 %v6012_v34 }
 0x4b9   :  { %5179 = vmatprep.subr.bf16.mxu0 %v6199_v54 }
 0x4bc   :  { %5180 = vmatpush3.bf16.msra.mxu0 %v6013_v35 }
 0x4bd   :  { %5181 = vmatprep.subr.bf16.mxu0 %v6199_v54 }
 0x4c0   :  { %5182 = vmatpush3.bf16.msra.mxu0 %v6014_v37 }
 0x4d8   :  { %v4043_v13 = vpop.f32.mrf.mxu1 }
 0x4d9   :  { %v4044_v18 = vadd.f32 %v4043_v13, %v4003_v12 }
 0x4da   :  { %v4045_v19 = vpop.f32.mrf.mxu1 }
 0x4db   :  { %vm4052_vm11 = vcmp.gt.f32.partialorder %v4044_v18, 0.0  ;;  %v4056_v20 = vmul.f32 0.01, %v4044_v18  ;;  %v4046_v21 = vadd.f32 %v4045_v19, %v4005_v14 }
 0x4dc   :  { %v4047_v22 = vpop.f32.mrf.mxu1 }
 0x4dd   :  { %vm4053_vm12 = vcmp.gt.f32.partialorder %v4046_v21, 0.0  ;;  %v4057_v24 = vmul.f32 0.01, %v4046_v21  ;;  %v4060_v25 = vsel %vm4052_vm11, %v4044_v18, %v4056_v20 }
 0x4de   :  { %v4048_v26 = vpop.f32.mrf.mxu1  ;;  %v4064_v23 = vpack.c.bf16 %v4060_v25, %v4060_v25 }
 0x4df   :  { %v4061_v27 = vsel %vm4053_vm12, %v4046_v21, %v4057_v24 }
 0x4e0   :  { %v4065_v59 = vpack.c.bf16 %v4061_v27, %v4061_v27 }
 0x4e2   :  { %4401 = vmatprep.mubr.bf16.mxu1 %v4065_v59 }
 0x4e3   :  { %4402 = vmatmul.mubr.bf16.vlgmr.msra.gmra.mxu1 %v4064_v23 }
 0x563   :  { %v5130_v38 = vpop.f32.mrf.mxu0 }
 0x565   :  { %v5131_v39 = vpop.f32.mrf.mxu0 }
 0x566   :  { %v5132_v29 = vadd.f32 %v5131_v39, %v5130_v38 }
 0x567   :  { %v5133_v40 = vpop.f32.mrf.mxu0 }
 0x568   :  { %v4364_v47 = vadd.f32 %v5132_v29, %v5072_v36 }
 0x569   :  { %v5134_v28 = vpop.f32.mrf.mxu0 }
 0x5a3   :  { %v5152_v45 = vpop.f32.mrf.mxu1 }
 0x5a5   :  { %v5153_v46 = vpop.f32.mrf.mxu1 }
 0x5a6   :  { %v5154_v48 = vadd.f32 %v5153_v46, %v5152_v45 }
 0x5a7   :  { %v5155_v50 = vpop.f32.mrf.mxu1 }
 0x5a8   :  { %v4404_v62 = vadd.f32 %v5154_v48, %v4364_v47 }
 0x5a9   :  { %v5156_v3 = vpop.f32.mrf.mxu1 }
 0x5aa   :  { %vm4409_vm14 = vcmp.gt.f32.partialorder %v4404_v62, 0.0  ;;  %v4410_v51 = vmul.f32 0.01, %v4404_v62 }
 0x5ac   :  { %v4411_v16 = vsel %vm4409_vm14, %v4404_v62, %v4410_v51 }
 0x5ad   :  { %v4412_v17 = vpack.c.bf16 %v4411_v16, %v4411_v16 }
 0x5af   :  { %5184 = vmatmul.mubr.bf16.vlgmr.msra.gmra.mxu0 %v4412_v17 }
 0x66f   :  { %v4518_v58 = vpop.f32.mrf.mxu0 }
 0x670   :  { %v4519_v53 = vadd.f32 %v5105_v56, %v4518_v58 }
 0x671   :  { %v5185_v49 = vpop.f32.mrf.mxu0 }
 0x672   :  { %v4524_v43 = vsel %vm2083_vm2, %v4519_v53, 0.0 }
 0x673   :  { %4525 = vadd.xlane.f32.xlu1 %v4524_v43  ;;  %v4521_v31 = vpop.f32.mrf.mxu0 }
 0x675   :  { %v5186_v57 = vpop.f32.mrf.mxu0 }
 0x684   :  { %4530 = vperm.xlu1 %5203, %v4519_v53  }
 0x6fc   :  { %v4526_v61 = vpop.xlane.xlu1 %4525 }
 0x6fd   :  { %v4527_v41 = vsub.f32 %v4526_v61, %v4519_v53 }
 0x6ff   :  { %v4534_v0 = vmul.f32 0.16666667, %v4527_v41 }
 0x700   :  { %v4531_v1 = vpop.permute.xlu1 %4530 }
 0x701   :  { %4537 = vperm.xlu0 %5204, %v4534_v0   ;;  %v4533_v2 = vadd.f32 %v4531_v1, %v4519_v53 }
 0x77c   :  { %v4538_v4 = vpop.permute.xlu0 %4537 }
 0x77d   :  { %v4540_v5 = vsub.f32 %v4533_v2, %v4538_v4 }
 0x77f   :  { %4541 = vst [vmem:[#allocation14] sm:$0x3] %v4540_v5 }
 0x780   :  { %6168 = shalt.err (!%p6165_p11)
}
 0x781   :  { %4551 = dma.vmem_to_hbm [thread:$0]  %s4549_s16, 32, %s6473_s11, [#allocation4]  }
 0x782   :  { %6185 = dma.done.wait [#allocation4], 32  }
 0x783   :  { %6186 = vsyncadd [#allocation4], 4294967264 }
 0x784   :  { %4555 = vsyncpa [#allocation3], 1 }
 0x785   :  { %4556 = vsyncpa [#allocation6], 1 }
 0x786   :  { %4557 = vsyncpa [#allocation9], 1 }
 0x787   :  { %4558 = vsyncpa [#allocation12], 1 }
 0x788   :  { %4559 = vsyncpa [#allocation4], 1 }

</bundles_post_ra>
